<compile_context>
chip_gen: v6e
topology: v6e:2x2x1
jax: 0.10.0
libtpu: 0.0.40
codegen_flags: <defaults>
</compile_context>

<pallas_src>
import jax
import jax.numpy as jnp
from jax.experimental import pallas as pl
from jax.experimental.pallas import tpu as pltpu

L = 3                      # sequence length implied by fc1(in_features=12), C5=4
EPS = 1e-5                 # nn.BatchNorm1d default eps
CHANNELS = [(1, 64), (64, 128), (128, 64), (64, 32), (32, 4)]


def _cnn1dmo_kernel(x_ref,
                    w1, g1, be1, w2, g2, be2, w3, g3, be3,
                    w4, g4, be4, w5, g5, be5,
                    fcw_ref, fcb_ref, out_ref):
    nl = x_ref.shape[0]                                   # N * L rows
    inv_nl = 1.0 / nl

    # Sample-boundary masks for conv padding=1, computed ONCE as (nl, 1) columns and
    # lane-broadcast in every layer.
    l_pos = jax.lax.broadcasted_iota(jnp.int32, (nl, 1), 0) % L
    prev_mask = jnp.where(l_pos == 0, 0.0, 1.0)          # r % L == 0 has no left neighbor
    next_mask = jnp.where(l_pos == L - 1, 0.0, 1.0)      # r % L == L-1 has no right neighbor

    def softplus(v):
        # nn.Softplus(beta=1, threshold=20); exp overflow (inf) is discarded by the where.
        return jnp.where(v > 20.0, v, jnp.log1p(jnp.exp(v)))

    def shift_prev(a):
        # row r <- a[r-1]; zero at sample starts.
        sh = jnp.concatenate(
            [jnp.zeros((1, a.shape[1]), jnp.float32), a[:nl - 1, :]], axis=0)
        return sh * prev_mask

    def shift_next(a):
        # row r <- a[r+1]; zero at sample ends.
        sh = jnp.concatenate(
            [a[1:, :], jnp.zeros((1, a.shape[1]), jnp.float32)], axis=0)
        return sh * next_mask

    def conv_bn_softplus(a, w_ref, g_ref, be_ref):
        cin = a.shape[1]
        w = w_ref[...]                                    # (3*cin, cout); rows = (tap, cin)
        prev = shift_prev(a)
        nxt = shift_next(a)
        if cin == 1:
            # Single-channel input: broadcast MAC on the VPU (a 1-deep matmul wastes the MXU).
            y = prev * w[0:1, :] + a * w[1:2, :] + nxt * w[2:3, :]
        else:
            y = (jnp.dot(prev, w[0:cin, :], preferred_element_type=jnp.float32)
                 + jnp.dot(a, w[cin:2 * cin, :], preferred_element_type=jnp.float32)
                 + jnp.dot(nxt, w[2 * cin:3 * cin, :], preferred_element_type=jnp.float32))
        # Training-mode BatchNorm1d: per-channel stats over (N, L), biased variance.
        # Conv bias omitted: a per-channel constant cancels exactly in (y - mean).
        mean = jnp.sum(y, axis=0, keepdims=True) * inv_nl
        yc = y - mean                                     # centered slab, reused for var
        var = jnp.sum(yc * yc, axis=0, keepdims=True) * inv_nl
        scale = jax.lax.rsqrt(var + EPS) * g_ref[...]     # fold gamma -> one slab multiply
        return softplus(yc * scale + be_ref[...])

    a = x_ref[...]                                        # (N*L, 1)
    a = conv_bn_softplus(a, w1, g1, be1)                  # (N*L, 64)
    a = conv_bn_softplus(a, w2, g2, be2)                  # (N*L, 128)
    a = conv_bn_softplus(a, w3, g3, be3)                  # (N*L, 64)
    a = conv_bn_softplus(a, w4, g4, be4)                  # (N*L, 32)
    a = conv_bn_softplus(a, w5, g5, be5)                  # (N*L, 4)

    # fc1: out[n] = fcb + sum_l a[n*L + l] @ W_l, with W_l = fcw[l*4:(l+1)*4, :].
    # Evaluated for every row (only rows with r % L == 0 are meaningful) so the store
    # stays fully lane-dense; the wrapper extracts rows 0, L, 2L, ... and lanes [:6].
    fcw = fcw_ref[...]                                    # (12, 128), lanes >= 6 are zero
    c5 = a.shape[1]                                       # 4
    acc = jnp.dot(a, fcw[0:c5, :], preferred_element_type=jnp.float32)
    for l in range(1, L):
        a_l = jnp.concatenate([a[l:, :], jnp.zeros((l, c5), jnp.float32)], axis=0)
        acc = acc + jnp.dot(a_l, fcw[l * c5:(l + 1) * c5, :],
                            preferred_element_type=jnp.float32)
    out_ref[...] = acc + fcb_ref[...]                     # (N*L, 128) lane-dense store


def cnn1dmo_forward(x, conv_params, fc_w, fc_b):
    """x: (N, 1, L) float32, PyTorch NCL layout. Returns (N, 6)."""
    n_batch = x.shape[0]
    nl = n_batch * L
    # ---- plain-JAX glue: layout transforms of the input & parameters ----
    x_k = jnp.transpose(x, (0, 2, 1)).reshape(nl, 1)
    flat = []
    for (w, _b, g, be) in conv_params:                    # conv bias is a no-op under
        cout, cin, _k = w.shape                           # the training-mode BN that follows
        # (Cout, Cin, K) -> (3*Cin, Cout) with row index k*Cin + ci = w[:, ci, k]
        flat += [jnp.transpose(w, (2, 1, 0)).reshape(3 * cin, cout),
                 g.reshape(1, cout), be.reshape(1, cout)]
    # PyTorch flatten index f = c*L + l; kernel row order r = l*4 + c.
    perm = jnp.array([(r % 4) * L + (r // 4) for r in range(4 * L)], jnp.int32)
    fcw_pad = jnp.zeros((4 * L, 128), jnp.float32).at[:, :6].set(fc_w.T[perm, :])
    fcb_pad = jnp.zeros((1, 128), jnp.float32).at[:, :6].set(fc_b)

    n_inputs = 1 + len(flat) + 2
    out_full = pl.pallas_call(
        _cnn1dmo_kernel,
        out_shape=jax.ShapeDtypeStruct((nl, 128), jnp.float32),
        in_specs=[pl.BlockSpec(memory_space=pltpu.MemorySpace.VMEM)] * n_inputs,
        out_specs=pl.BlockSpec(memory_space=pltpu.MemorySpace.VMEM),
    )(x_k, *flat, fcw_pad, fcb_pad)
    return out_full[0::L, :6]


def _reference(x, conv_params, fc_w, fc_b):
    a = x
    for (w, b, g, be) in conv_params:
        a = jax.lax.conv_general_dilated(
            a, w, window_strides=(1,), padding=((1, 1),),
            dimension_numbers=("NCH", "OIH", "NCH"))
        a = a + b[None, :, None]
        mean = jnp.mean(a, axis=(0, 2), keepdims=True)
        var = jnp.mean((a - mean) ** 2, axis=(0, 2), keepdims=True)
        a = (a - mean) / jnp.sqrt(var + EPS) * g[None, :, None] + be[None, :, None]
        a = jnp.where(a > 20.0, a, jnp.log1p(jnp.exp(jnp.minimum(a, 20.0))))
    a = a.reshape(a.shape[0], -1)
    return a @ fc_w.T + fc_b


if __name__ == "__main__":
    key = jax.random.PRNGKey(0)
    keys = iter(jax.random.split(key, 4 * len(CHANNELS) + 3))

    conv_params = []
    for cin, cout in CHANNELS:
        w = 0.1 * jax.random.normal(next(keys), (cout, cin, 3), jnp.float32)
        b = 0.1 * jax.random.normal(next(keys), (cout,), jnp.float32)
        g = 1.0 + 0.1 * jax.random.normal(next(keys), (cout,), jnp.float32)
        be = 0.1 * jax.random.normal(next(keys), (cout,), jnp.float32)
        conv_params.append((w, b, g, be))
    fc_w = 0.1 * jax.random.normal(next(keys), (6, 4 * L), jnp.float32)
    fc_b = 0.1 * jax.random.normal(next(keys), (6,), jnp.float32)

    x = jax.random.normal(next(keys), (2, 1, L), jnp.float32)   # (N=2, Cin=1, L=3)

    out = jax.block_until_ready(cnn1dmo_forward(x, conv_params, fc_w, fc_b))
    ref = _reference(x, conv_params, fc_w, fc_b)
    assert out.shape == (2, 6)
    assert jnp.allclose(out, ref, rtol=1e-4, atol=1e-4), (out, ref)
    print("KERNEL_OK")
</pallas_src>

<mosaic_0001>
module attributes {stable_mosaic.version = 11 : i64} {
  func.func @_cnn1dmo_kernel(%arg0: memref<6x1xf32, #tpu.memory_space<vmem>>, %arg1: memref<3x64xf32, #tpu.memory_space<vmem>>, %arg2: memref<1x64xf32, #tpu.memory_space<vmem>>, %arg3: memref<1x64xf32, #tpu.memory_space<vmem>>, %arg4: memref<192x128xf32, #tpu.memory_space<vmem>>, %arg5: memref<1x128xf32, #tpu.memory_space<vmem>>, %arg6: memref<1x128xf32, #tpu.memory_space<vmem>>, %arg7: memref<384x64xf32, #tpu.memory_space<vmem>>, %arg8: memref<1x64xf32, #tpu.memory_space<vmem>>, %arg9: memref<1x64xf32, #tpu.memory_space<vmem>>, %arg10: memref<192x32xf32, #tpu.memory_space<vmem>>, %arg11: memref<1x32xf32, #tpu.memory_space<vmem>>, %arg12: memref<1x32xf32, #tpu.memory_space<vmem>>, %arg13: memref<96x4xf32, #tpu.memory_space<vmem>>, %arg14: memref<1x4xf32, #tpu.memory_space<vmem>>, %arg15: memref<1x4xf32, #tpu.memory_space<vmem>>, %arg16: memref<12x128xf32, #tpu.memory_space<vmem>>, %arg17: memref<1x128xf32, #tpu.memory_space<vmem>>, %arg18: memref<6x128xf32, #tpu.memory_space<vmem>>) attributes {dimension_semantics = [], scalar_prefetch = 0 : i64, scratch_operands = 0 : i64, tpu.core_type = #tpu.core_type<tc>} {
    %0 = tpu.iota {dimensions = array<i32: 0>} : vector<6x1xi32>
    %c3_i32 = arith.constant 3 : i32
    %c0_i32 = arith.constant 0 : i32
    %1 = arith.cmpi eq, %c3_i32, %c0_i32 : i32
    %c1_i32 = arith.constant 1 : i32
    %2 = arith.select %1, %c1_i32, %c3_i32 : i32
    %3 = vector.broadcast %2 : i32 to vector<6x1xi32>
    %4 = arith.remsi %0, %3 : vector<6x1xi32>
    %c0_i32_0 = arith.constant 0 : i32
    %5 = vector.broadcast %c0_i32_0 : i32 to vector<6x1xi32>
    %6 = arith.cmpi ne, %4, %5 : vector<6x1xi32>
    %c0_i32_1 = arith.constant 0 : i32
    %7 = vector.broadcast %c0_i32_1 : i32 to vector<6x1xi32>
    %8 = arith.cmpi slt, %4, %7 : vector<6x1xi32>
    %c0_i32_2 = arith.constant 0 : i32
    %9 = arith.cmpi slt, %2, %c0_i32_2 : i32
    %10 = vector.broadcast %9 : i1 to vector<6x1xi1>
    %11 = vector.broadcast %10 : vector<6x1xi1> to vector<6x1xi1>
    %12 = arith.xori %8, %11 : vector<6x1xi1>
    %13 = arith.andi %12, %6 : vector<6x1xi1>
    %14 = vector.broadcast %2 : i32 to vector<6x1xi32>
    %15 = arith.addi %4, %14 : vector<6x1xi32>
    %16 = arith.select %13, %15, %4 : vector<6x1xi1>, vector<6x1xi32>
    %c0_i32_3 = arith.constant 0 : i32
    %17 = vector.broadcast %c0_i32_3 : i32 to vector<6x1xi32>
    %18 = arith.cmpi eq, %16, %17 : vector<6x1xi32>
    %cst = arith.constant 0.000000e+00 : f32
    %cst_4 = arith.constant 1.000000e+00 : f32
    %19 = vector.broadcast %cst : f32 to vector<6x1xf32>
    %20 = vector.broadcast %cst_4 : f32 to vector<6x1xf32>
    %21 = arith.select %18, %19, %20 : vector<6x1xi1>, vector<6x1xf32>
    %c2_i32 = arith.constant 2 : i32
    %22 = vector.broadcast %c2_i32 : i32 to vector<6x1xi32>
    %23 = arith.cmpi eq, %16, %22 : vector<6x1xi32>
    %cst_5 = arith.constant 0.000000e+00 : f32
    %cst_6 = arith.constant 1.000000e+00 : f32
    %24 = vector.broadcast %cst_5 : f32 to vector<6x1xf32>
    %25 = vector.broadcast %cst_6 : f32 to vector<6x1xf32>
    %26 = arith.select %23, %24, %25 : vector<6x1xi1>, vector<6x1xf32>
    %c0 = arith.constant 0 : index
    %c0_7 = arith.constant 0 : index
    %27 = vector.load %arg0[%c0, %c0_7] : memref<6x1xf32, #tpu.memory_space<vmem>>, vector<6x1xf32>
    %c0_8 = arith.constant 0 : index
    %c0_9 = arith.constant 0 : index
    %28 = vector.load %arg1[%c0_8, %c0_9] : memref<3x64xf32, #tpu.memory_space<vmem>>, vector<3x64xf32>
    %cst_10 = arith.constant 0.000000e+00 : f32
    %29 = vector.broadcast %cst_10 : f32 to vector<1x1xf32>
    %30 = vector.extract_strided_slice %27 {offsets = [0, 0], sizes = [5, 1], strides = [1, 1]} : vector<6x1xf32> to vector<5x1xf32>
    %31 = tpu.concatenate %29, %30 in 0 : vector<1x1xf32>, vector<5x1xf32> -> vector<6x1xf32>
    %32 = arith.mulf %31, %21 : vector<6x1xf32>
    %33 = vector.extract_strided_slice %27 {offsets = [1, 0], sizes = [5, 1], strides = [1, 1]} : vector<6x1xf32> to vector<5x1xf32>
    %cst_11 = arith.constant 0.000000e+00 : f32
    %34 = vector.broadcast %cst_11 : f32 to vector<1x1xf32>
    %35 = tpu.concatenate %33, %34 in 0 : vector<5x1xf32>, vector<1x1xf32> -> vector<6x1xf32>
    %36 = arith.mulf %35, %26 : vector<6x1xf32>
    %37 = vector.extract_strided_slice %28 {offsets = [0, 0], sizes = [1, 64], strides = [1, 1]} : vector<3x64xf32> to vector<1x64xf32>
    %38 = vector.broadcast %32 : vector<6x1xf32> to vector<6x64xf32>
    %39 = vector.broadcast %37 : vector<1x64xf32> to vector<6x64xf32>
    %40 = arith.mulf %38, %39 : vector<6x64xf32>
    %41 = vector.extract_strided_slice %28 {offsets = [1, 0], sizes = [1, 64], strides = [1, 1]} : vector<3x64xf32> to vector<1x64xf32>
    %42 = vector.broadcast %27 : vector<6x1xf32> to vector<6x64xf32>
    %43 = vector.broadcast %41 : vector<1x64xf32> to vector<6x64xf32>
    %44 = arith.mulf %42, %43 : vector<6x64xf32>
    %45 = arith.addf %40, %44 : vector<6x64xf32>
    %46 = vector.extract_strided_slice %28 {offsets = [2, 0], sizes = [1, 64], strides = [1, 1]} : vector<3x64xf32> to vector<1x64xf32>
    %47 = vector.broadcast %36 : vector<6x1xf32> to vector<6x64xf32>
    %48 = vector.broadcast %46 : vector<1x64xf32> to vector<6x64xf32>
    %49 = arith.mulf %47, %48 : vector<6x64xf32>
    %50 = arith.addf %45, %49 : vector<6x64xf32>
    %cst_12 = arith.constant dense<0.000000e+00> : vector<64xf32>
    %51 = vector.multi_reduction <add>, %50, %cst_12 [0] : vector<6x64xf32> to vector<64xf32>
    %52 = vector.shape_cast %51 : vector<64xf32> to vector<1x64xf32>
    %cst_13 = arith.constant 0.166666672 : f32
    %53 = vector.broadcast %cst_13 : f32 to vector<1x64xf32>
    %54 = arith.mulf %52, %53 : vector<1x64xf32>
    %55 = vector.broadcast %54 : vector<1x64xf32> to vector<6x64xf32>
    %56 = arith.subf %50, %55 : vector<6x64xf32>
    %57 = arith.mulf %56, %56 : vector<6x64xf32>
    %cst_14 = arith.constant dense<0.000000e+00> : vector<64xf32>
    %58 = vector.multi_reduction <add>, %57, %cst_14 [0] : vector<6x64xf32> to vector<64xf32>
    %59 = vector.shape_cast %58 : vector<64xf32> to vector<1x64xf32>
    %cst_15 = arith.constant 0.166666672 : f32
    %60 = vector.broadcast %cst_15 : f32 to vector<1x64xf32>
    %61 = arith.mulf %59, %60 : vector<1x64xf32>
    %cst_16 = arith.constant 9.99999974E-6 : f32
    %62 = vector.broadcast %cst_16 : f32 to vector<1x64xf32>
    %63 = arith.addf %61, %62 : vector<1x64xf32>
    %64 = math.rsqrt %63 : vector<1x64xf32>
    %c0_17 = arith.constant 0 : index
    %c0_18 = arith.constant 0 : index
    %65 = vector.load %arg2[%c0_17, %c0_18] : memref<1x64xf32, #tpu.memory_space<vmem>>, vector<1x64xf32>
    %66 = arith.mulf %64, %65 : vector<1x64xf32>
    %67 = vector.broadcast %66 : vector<1x64xf32> to vector<6x64xf32>
    %68 = arith.mulf %56, %67 : vector<6x64xf32>
    %c0_19 = arith.constant 0 : index
    %c0_20 = arith.constant 0 : index
    %69 = vector.load %arg3[%c0_19, %c0_20] : memref<1x64xf32, #tpu.memory_space<vmem>>, vector<1x64xf32>
    %70 = vector.broadcast %69 : vector<1x64xf32> to vector<6x64xf32>
    %71 = arith.addf %68, %70 : vector<6x64xf32>
    %cst_21 = arith.constant 2.000000e+01 : f32
    %72 = vector.broadcast %cst_21 : f32 to vector<6x64xf32>
    %73 = arith.cmpf ogt, %71, %72 : vector<6x64xf32>
    %74 = math.exp %71 : vector<6x64xf32>
    %75 = math.log1p %74 : vector<6x64xf32>
    %76 = arith.select %73, %71, %75 : vector<6x64xi1>, vector<6x64xf32>
    %c0_22 = arith.constant 0 : index
    %c0_23 = arith.constant 0 : index
    %77 = vector.load %arg4[%c0_22, %c0_23] : memref<192x128xf32, #tpu.memory_space<vmem>>, vector<192x128xf32>
    %cst_24 = arith.constant 0.000000e+00 : f32
    %78 = vector.broadcast %cst_24 : f32 to vector<1x64xf32>
    %79 = vector.extract_strided_slice %76 {offsets = [0, 0], sizes = [5, 64], strides = [1, 1]} : vector<6x64xf32> to vector<5x64xf32>
    %80 = tpu.concatenate %78, %79 in 0 : vector<1x64xf32>, vector<5x64xf32> -> vector<6x64xf32>
    %81 = vector.broadcast %21 : vector<6x1xf32> to vector<6x64xf32>
    %82 = arith.mulf %80, %81 : vector<6x64xf32>
    %83 = vector.extract_strided_slice %76 {offsets = [1, 0], sizes = [5, 64], strides = [1, 1]} : vector<6x64xf32> to vector<5x64xf32>
    %cst_25 = arith.constant 0.000000e+00 : f32
    %84 = vector.broadcast %cst_25 : f32 to vector<1x64xf32>
    %85 = tpu.concatenate %83, %84 in 0 : vector<5x64xf32>, vector<1x64xf32> -> vector<6x64xf32>
    %86 = vector.broadcast %26 : vector<6x1xf32> to vector<6x64xf32>
    %87 = arith.mulf %85, %86 : vector<6x64xf32>
    %88 = vector.extract_strided_slice %77 {offsets = [0, 0], sizes = [64, 128], strides = [1, 1]} : vector<192x128xf32> to vector<64x128xf32>
    %cst_26 = arith.constant dense<0.000000e+00> : vector<6x128xf32>
    %89 = tpu.matmul %82, %88, %cst_26 {dimension_numbers = #tpu.dot_dimension_numbers<[1], [0], [0], [1], [0, 0, 1, 1], [], []>} : vector<6x64xf32>, vector<64x128xf32>, vector<6x128xf32> -> vector<6x128xf32>
    %90 = vector.extract_strided_slice %77 {offsets = [64, 0], sizes = [64, 128], strides = [1, 1]} : vector<192x128xf32> to vector<64x128xf32>
    %cst_27 = arith.constant dense<0.000000e+00> : vector<6x128xf32>
    %91 = tpu.matmul %76, %90, %cst_27 {dimension_numbers = #tpu.dot_dimension_numbers<[1], [0], [0], [1], [0, 0, 1, 1], [], []>} : vector<6x64xf32>, vector<64x128xf32>, vector<6x128xf32> -> vector<6x128xf32>
    %92 = arith.addf %89, %91 : vector<6x128xf32>
    %93 = vector.extract_strided_slice %77 {offsets = [128, 0], sizes = [64, 128], strides = [1, 1]} : vector<192x128xf32> to vector<64x128xf32>
    %cst_28 = arith.constant dense<0.000000e+00> : vector<6x128xf32>
    %94 = tpu.matmul %87, %93, %cst_28 {dimension_numbers = #tpu.dot_dimension_numbers<[1], [0], [0], [1], [0, 0, 1, 1], [], []>} : vector<6x64xf32>, vector<64x128xf32>, vector<6x128xf32> -> vector<6x128xf32>
    %95 = arith.addf %92, %94 : vector<6x128xf32>
    %cst_29 = arith.constant dense<0.000000e+00> : vector<128xf32>
    %96 = vector.multi_reduction <add>, %95, %cst_29 [0] : vector<6x128xf32> to vector<128xf32>
    %97 = vector.shape_cast %96 : vector<128xf32> to vector<1x128xf32>
    %cst_30 = arith.constant 0.166666672 : f32
    %98 = vector.broadcast %cst_30 : f32 to vector<1x128xf32>
    %99 = arith.mulf %97, %98 : vector<1x128xf32>
    %100 = vector.broadcast %99 : vector<1x128xf32> to vector<6x128xf32>
    %101 = arith.subf %95, %100 : vector<6x128xf32>
    %102 = arith.mulf %101, %101 : vector<6x128xf32>
    %cst_31 = arith.constant dense<0.000000e+00> : vector<128xf32>
    %103 = vector.multi_reduction <add>, %102, %cst_31 [0] : vector<6x128xf32> to vector<128xf32>
    %104 = vector.shape_cast %103 : vector<128xf32> to vector<1x128xf32>
    %cst_32 = arith.constant 0.166666672 : f32
    %105 = vector.broadcast %cst_32 : f32 to vector<1x128xf32>
    %106 = arith.mulf %104, %105 : vector<1x128xf32>
    %cst_33 = arith.constant 9.99999974E-6 : f32
    %107 = vector.broadcast %cst_33 : f32 to vector<1x128xf32>
    %108 = arith.addf %106, %107 : vector<1x128xf32>
    %109 = math.rsqrt %108 : vector<1x128xf32>
    %c0_34 = arith.constant 0 : index
    %c0_35 = arith.constant 0 : index
    %110 = vector.load %arg5[%c0_34, %c0_35] : memref<1x128xf32, #tpu.memory_space<vmem>>, vector<1x128xf32>
    %111 = arith.mulf %109, %110 : vector<1x128xf32>
    %112 = vector.broadcast %111 : vector<1x128xf32> to vector<6x128xf32>
    %113 = arith.mulf %101, %112 : vector<6x128xf32>
    %c0_36 = arith.constant 0 : index
    %c0_37 = arith.constant 0 : index
    %114 = vector.load %arg6[%c0_36, %c0_37] : memref<1x128xf32, #tpu.memory_space<vmem>>, vector<1x128xf32>
    %115 = vector.broadcast %114 : vector<1x128xf32> to vector<6x128xf32>
    %116 = arith.addf %113, %115 : vector<6x128xf32>
    %cst_38 = arith.constant 2.000000e+01 : f32
    %117 = vector.broadcast %cst_38 : f32 to vector<6x128xf32>
    %118 = arith.cmpf ogt, %116, %117 : vector<6x128xf32>
    %119 = math.exp %116 : vector<6x128xf32>
    %120 = math.log1p %119 : vector<6x128xf32>
    %121 = arith.select %118, %116, %120 : vector<6x128xi1>, vector<6x128xf32>
    %c0_39 = arith.constant 0 : index
    %c0_40 = arith.constant 0 : index
    %122 = vector.load %arg7[%c0_39, %c0_40] : memref<384x64xf32, #tpu.memory_space<vmem>>, vector<384x64xf32>
    %cst_41 = arith.constant 0.000000e+00 : f32
    %123 = vector.broadcast %cst_41 : f32 to vector<1x128xf32>
    %124 = vector.extract_strided_slice %121 {offsets = [0, 0], sizes = [5, 128], strides = [1, 1]} : vector<6x128xf32> to vector<5x128xf32>
    %125 = tpu.concatenate %123, %124 in 0 : vector<1x128xf32>, vector<5x128xf32> -> vector<6x128xf32>
    %126 = vector.broadcast %21 : vector<6x1xf32> to vector<6x128xf32>
    %127 = arith.mulf %125, %126 : vector<6x128xf32>
    %128 = vector.extract_strided_slice %121 {offsets = [1, 0], sizes = [5, 128], strides = [1, 1]} : vector<6x128xf32> to vector<5x128xf32>
    %cst_42 = arith.constant 0.000000e+00 : f32
    %129 = vector.broadcast %cst_42 : f32 to vector<1x128xf32>
    %130 = tpu.concatenate %128, %129 in 0 : vector<5x128xf32>, vector<1x128xf32> -> vector<6x128xf32>
    %131 = vector.broadcast %26 : vector<6x1xf32> to vector<6x128xf32>
    %132 = arith.mulf %130, %131 : vector<6x128xf32>
    %133 = vector.extract_strided_slice %122 {offsets = [0, 0], sizes = [128, 64], strides = [1, 1]} : vector<384x64xf32> to vector<128x64xf32>
    %cst_43 = arith.constant dense<0.000000e+00> : vector<6x64xf32>
    %134 = tpu.matmul %127, %133, %cst_43 {dimension_numbers = #tpu.dot_dimension_numbers<[1], [0], [0], [1], [0, 0, 1, 1], [], []>} : vector<6x128xf32>, vector<128x64xf32>, vector<6x64xf32> -> vector<6x64xf32>
    %135 = vector.extract_strided_slice %122 {offsets = [128, 0], sizes = [128, 64], strides = [1, 1]} : vector<384x64xf32> to vector<128x64xf32>
    %cst_44 = arith.constant dense<0.000000e+00> : vector<6x64xf32>
    %136 = tpu.matmul %121, %135, %cst_44 {dimension_numbers = #tpu.dot_dimension_numbers<[1], [0], [0], [1], [0, 0, 1, 1], [], []>} : vector<6x128xf32>, vector<128x64xf32>, vector<6x64xf32> -> vector<6x64xf32>
    %137 = arith.addf %134, %136 : vector<6x64xf32>
    %138 = vector.extract_strided_slice %122 {offsets = [256, 0], sizes = [128, 64], strides = [1, 1]} : vector<384x64xf32> to vector<128x64xf32>
    %cst_45 = arith.constant dense<0.000000e+00> : vector<6x64xf32>
    %139 = tpu.matmul %132, %138, %cst_45 {dimension_numbers = #tpu.dot_dimension_numbers<[1], [0], [0], [1], [0, 0, 1, 1], [], []>} : vector<6x128xf32>, vector<128x64xf32>, vector<6x64xf32> -> vector<6x64xf32>
    %140 = arith.addf %137, %139 : vector<6x64xf32>
    %cst_46 = arith.constant dense<0.000000e+00> : vector<64xf32>
    %141 = vector.multi_reduction <add>, %140, %cst_46 [0] : vector<6x64xf32> to vector<64xf32>
    %142 = vector.shape_cast %141 : vector<64xf32> to vector<1x64xf32>
    %cst_47 = arith.constant 0.166666672 : f32
    %143 = vector.broadcast %cst_47 : f32 to vector<1x64xf32>
    %144 = arith.mulf %142, %143 : vector<1x64xf32>
    %145 = vector.broadcast %144 : vector<1x64xf32> to vector<6x64xf32>
    %146 = arith.subf %140, %145 : vector<6x64xf32>
    %147 = arith.mulf %146, %146 : vector<6x64xf32>
    %cst_48 = arith.constant dense<0.000000e+00> : vector<64xf32>
    %148 = vector.multi_reduction <add>, %147, %cst_48 [0] : vector<6x64xf32> to vector<64xf32>
    %149 = vector.shape_cast %148 : vector<64xf32> to vector<1x64xf32>
    %cst_49 = arith.constant 0.166666672 : f32
    %150 = vector.broadcast %cst_49 : f32 to vector<1x64xf32>
    %151 = arith.mulf %149, %150 : vector<1x64xf32>
    %cst_50 = arith.constant 9.99999974E-6 : f32
    %152 = vector.broadcast %cst_50 : f32 to vector<1x64xf32>
    %153 = arith.addf %151, %152 : vector<1x64xf32>
    %154 = math.rsqrt %153 : vector<1x64xf32>
    %c0_51 = arith.constant 0 : index
    %c0_52 = arith.constant 0 : index
    %155 = vector.load %arg8[%c0_51, %c0_52] : memref<1x64xf32, #tpu.memory_space<vmem>>, vector<1x64xf32>
    %156 = arith.mulf %154, %155 : vector<1x64xf32>
    %157 = vector.broadcast %156 : vector<1x64xf32> to vector<6x64xf32>
    %158 = arith.mulf %146, %157 : vector<6x64xf32>
    %c0_53 = arith.constant 0 : index
    %c0_54 = arith.constant 0 : index
    %159 = vector.load %arg9[%c0_53, %c0_54] : memref<1x64xf32, #tpu.memory_space<vmem>>, vector<1x64xf32>
    %160 = vector.broadcast %159 : vector<1x64xf32> to vector<6x64xf32>
    %161 = arith.addf %158, %160 : vector<6x64xf32>
    %cst_55 = arith.constant 2.000000e+01 : f32
    %162 = vector.broadcast %cst_55 : f32 to vector<6x64xf32>
    %163 = arith.cmpf ogt, %161, %162 : vector<6x64xf32>
    %164 = math.exp %161 : vector<6x64xf32>
    %165 = math.log1p %164 : vector<6x64xf32>
    %166 = arith.select %163, %161, %165 : vector<6x64xi1>, vector<6x64xf32>
    %c0_56 = arith.constant 0 : index
    %c0_57 = arith.constant 0 : index
    %167 = vector.load %arg10[%c0_56, %c0_57] : memref<192x32xf32, #tpu.memory_space<vmem>>, vector<192x32xf32>
    %cst_58 = arith.constant 0.000000e+00 : f32
    %168 = vector.broadcast %cst_58 : f32 to vector<1x64xf32>
    %169 = vector.extract_strided_slice %166 {offsets = [0, 0], sizes = [5, 64], strides = [1, 1]} : vector<6x64xf32> to vector<5x64xf32>
    %170 = tpu.concatenate %168, %169 in 0 : vector<1x64xf32>, vector<5x64xf32> -> vector<6x64xf32>
    %171 = vector.broadcast %21 : vector<6x1xf32> to vector<6x64xf32>
    %172 = arith.mulf %170, %171 : vector<6x64xf32>
    %173 = vector.extract_strided_slice %166 {offsets = [1, 0], sizes = [5, 64], strides = [1, 1]} : vector<6x64xf32> to vector<5x64xf32>
    %cst_59 = arith.constant 0.000000e+00 : f32
    %174 = vector.broadcast %cst_59 : f32 to vector<1x64xf32>
    %175 = tpu.concatenate %173, %174 in 0 : vector<5x64xf32>, vector<1x64xf32> -> vector<6x64xf32>
    %176 = vector.broadcast %26 : vector<6x1xf32> to vector<6x64xf32>
    %177 = arith.mulf %175, %176 : vector<6x64xf32>
    %178 = vector.extract_strided_slice %167 {offsets = [0, 0], sizes = [64, 32], strides = [1, 1]} : vector<192x32xf32> to vector<64x32xf32>
    %cst_60 = arith.constant dense<0.000000e+00> : vector<6x32xf32>
    %179 = tpu.matmul %172, %178, %cst_60 {dimension_numbers = #tpu.dot_dimension_numbers<[1], [0], [0], [1], [0, 0, 1, 1], [], []>} : vector<6x64xf32>, vector<64x32xf32>, vector<6x32xf32> -> vector<6x32xf32>
    %180 = vector.extract_strided_slice %167 {offsets = [64, 0], sizes = [64, 32], strides = [1, 1]} : vector<192x32xf32> to vector<64x32xf32>
    %cst_61 = arith.constant dense<0.000000e+00> : vector<6x32xf32>
    %181 = tpu.matmul %166, %180, %cst_61 {dimension_numbers = #tpu.dot_dimension_numbers<[1], [0], [0], [1], [0, 0, 1, 1], [], []>} : vector<6x64xf32>, vector<64x32xf32>, vector<6x32xf32> -> vector<6x32xf32>
    %182 = arith.addf %179, %181 : vector<6x32xf32>
    %183 = vector.extract_strided_slice %167 {offsets = [128, 0], sizes = [64, 32], strides = [1, 1]} : vector<192x32xf32> to vector<64x32xf32>
    %cst_62 = arith.constant dense<0.000000e+00> : vector<6x32xf32>
    %184 = tpu.matmul %177, %183, %cst_62 {dimension_numbers = #tpu.dot_dimension_numbers<[1], [0], [0], [1], [0, 0, 1, 1], [], []>} : vector<6x64xf32>, vector<64x32xf32>, vector<6x32xf32> -> vector<6x32xf32>
    %185 = arith.addf %182, %184 : vector<6x32xf32>
    %cst_63 = arith.constant dense<0.000000e+00> : vector<32xf32>
    %186 = vector.multi_reduction <add>, %185, %cst_63 [0] : vector<6x32xf32> to vector<32xf32>
    %187 = vector.shape_cast %186 : vector<32xf32> to vector<1x32xf32>
    %cst_64 = arith.constant 0.166666672 : f32
    %188 = vector.broadcast %cst_64 : f32 to vector<1x32xf32>
    %189 = arith.mulf %187, %188 : vector<1x32xf32>
    %190 = vector.broadcast %189 : vector<1x32xf32> to vector<6x32xf32>
    %191 = arith.subf %185, %190 : vector<6x32xf32>
    %192 = arith.mulf %191, %191 : vector<6x32xf32>
    %cst_65 = arith.constant dense<0.000000e+00> : vector<32xf32>
    %193 = vector.multi_reduction <add>, %192, %cst_65 [0] : vector<6x32xf32> to vector<32xf32>
    %194 = vector.shape_cast %193 : vector<32xf32> to vector<1x32xf32>
    %cst_66 = arith.constant 0.166666672 : f32
    %195 = vector.broadcast %cst_66 : f32 to vector<1x32xf32>
    %196 = arith.mulf %194, %195 : vector<1x32xf32>
    %cst_67 = arith.constant 9.99999974E-6 : f32
    %197 = vector.broadcast %cst_67 : f32 to vector<1x32xf32>
    %198 = arith.addf %196, %197 : vector<1x32xf32>
    %199 = math.rsqrt %198 : vector<1x32xf32>
    %c0_68 = arith.constant 0 : index
    %c0_69 = arith.constant 0 : index
    %200 = vector.load %arg11[%c0_68, %c0_69] : memref<1x32xf32, #tpu.memory_space<vmem>>, vector<1x32xf32>
    %201 = arith.mulf %199, %200 : vector<1x32xf32>
    %202 = vector.broadcast %201 : vector<1x32xf32> to vector<6x32xf32>
    %203 = arith.mulf %191, %202 : vector<6x32xf32>
    %c0_70 = arith.constant 0 : index
    %c0_71 = arith.constant 0 : index
    %204 = vector.load %arg12[%c0_70, %c0_71] : memref<1x32xf32, #tpu.memory_space<vmem>>, vector<1x32xf32>
    %205 = vector.broadcast %204 : vector<1x32xf32> to vector<6x32xf32>
    %206 = arith.addf %203, %205 : vector<6x32xf32>
    %cst_72 = arith.constant 2.000000e+01 : f32
    %207 = vector.broadcast %cst_72 : f32 to vector<6x32xf32>
    %208 = arith.cmpf ogt, %206, %207 : vector<6x32xf32>
    %209 = math.exp %206 : vector<6x32xf32>
    %210 = math.log1p %209 : vector<6x32xf32>
    %211 = arith.select %208, %206, %210 : vector<6x32xi1>, vector<6x32xf32>
    %c0_73 = arith.constant 0 : index
    %c0_74 = arith.constant 0 : index
    %212 = vector.load %arg13[%c0_73, %c0_74] : memref<96x4xf32, #tpu.memory_space<vmem>>, vector<96x4xf32>
    %cst_75 = arith.constant 0.000000e+00 : f32
    %213 = vector.broadcast %cst_75 : f32 to vector<1x32xf32>
    %214 = vector.extract_strided_slice %211 {offsets = [0, 0], sizes = [5, 32], strides = [1, 1]} : vector<6x32xf32> to vector<5x32xf32>
    %215 = tpu.concatenate %213, %214 in 0 : vector<1x32xf32>, vector<5x32xf32> -> vector<6x32xf32>
    %216 = vector.broadcast %21 : vector<6x1xf32> to vector<6x32xf32>
    %217 = arith.mulf %215, %216 : vector<6x32xf32>
    %218 = vector.extract_strided_slice %211 {offsets = [1, 0], sizes = [5, 32], strides = [1, 1]} : vector<6x32xf32> to vector<5x32xf32>
    %cst_76 = arith.constant 0.000000e+00 : f32
    %219 = vector.broadcast %cst_76 : f32 to vector<1x32xf32>
    %220 = tpu.concatenate %218, %219 in 0 : vector<5x32xf32>, vector<1x32xf32> -> vector<6x32xf32>
    %221 = vector.broadcast %26 : vector<6x1xf32> to vector<6x32xf32>
    %222 = arith.mulf %220, %221 : vector<6x32xf32>
    %223 = vector.extract_strided_slice %212 {offsets = [0, 0], sizes = [32, 4], strides = [1, 1]} : vector<96x4xf32> to vector<32x4xf32>
    %cst_77 = arith.constant dense<0.000000e+00> : vector<6x4xf32>
    %224 = tpu.matmul %217, %223, %cst_77 {dimension_numbers = #tpu.dot_dimension_numbers<[1], [0], [0], [1], [0, 0, 1, 1], [], []>} : vector<6x32xf32>, vector<32x4xf32>, vector<6x4xf32> -> vector<6x4xf32>
    %225 = vector.extract_strided_slice %212 {offsets = [32, 0], sizes = [32, 4], strides = [1, 1]} : vector<96x4xf32> to vector<32x4xf32>
    %cst_78 = arith.constant dense<0.000000e+00> : vector<6x4xf32>
    %226 = tpu.matmul %211, %225, %cst_78 {dimension_numbers = #tpu.dot_dimension_numbers<[1], [0], [0], [1], [0, 0, 1, 1], [], []>} : vector<6x32xf32>, vector<32x4xf32>, vector<6x4xf32> -> vector<6x4xf32>
    %227 = arith.addf %224, %226 : vector<6x4xf32>
    %228 = vector.extract_strided_slice %212 {offsets = [64, 0], sizes = [32, 4], strides = [1, 1]} : vector<96x4xf32> to vector<32x4xf32>
    %cst_79 = arith.constant dense<0.000000e+00> : vector<6x4xf32>
    %229 = tpu.matmul %222, %228, %cst_79 {dimension_numbers = #tpu.dot_dimension_numbers<[1], [0], [0], [1], [0, 0, 1, 1], [], []>} : vector<6x32xf32>, vector<32x4xf32>, vector<6x4xf32> -> vector<6x4xf32>
    %230 = arith.addf %227, %229 : vector<6x4xf32>
    %cst_80 = arith.constant dense<0.000000e+00> : vector<4xf32>
    %231 = vector.multi_reduction <add>, %230, %cst_80 [0] : vector<6x4xf32> to vector<4xf32>
    %232 = vector.shape_cast %231 : vector<4xf32> to vector<1x4xf32>
    %cst_81 = arith.constant 0.166666672 : f32
    %233 = vector.broadcast %cst_81 : f32 to vector<1x4xf32>
    %234 = arith.mulf %232, %233 : vector<1x4xf32>
    %235 = vector.broadcast %234 : vector<1x4xf32> to vector<6x4xf32>
    %236 = arith.subf %230, %235 : vector<6x4xf32>
    %237 = arith.mulf %236, %236 : vector<6x4xf32>
    %cst_82 = arith.constant dense<0.000000e+00> : vector<4xf32>
    %238 = vector.multi_reduction <add>, %237, %cst_82 [0] : vector<6x4xf32> to vector<4xf32>
    %239 = vector.shape_cast %238 : vector<4xf32> to vector<1x4xf32>
    %cst_83 = arith.constant 0.166666672 : f32
    %240 = vector.broadcast %cst_83 : f32 to vector<1x4xf32>
    %241 = arith.mulf %239, %240 : vector<1x4xf32>
    %cst_84 = arith.constant 9.99999974E-6 : f32
    %242 = vector.broadcast %cst_84 : f32 to vector<1x4xf32>
    %243 = arith.addf %241, %242 : vector<1x4xf32>
    %244 = math.rsqrt %243 : vector<1x4xf32>
    %c0_85 = arith.constant 0 : index
    %c0_86 = arith.constant 0 : index
    %245 = vector.load %arg14[%c0_85, %c0_86] : memref<1x4xf32, #tpu.memory_space<vmem>>, vector<1x4xf32>
    %246 = arith.mulf %244, %245 : vector<1x4xf32>
    %247 = vector.broadcast %246 : vector<1x4xf32> to vector<6x4xf32>
    %248 = arith.mulf %236, %247 : vector<6x4xf32>
    %c0_87 = arith.constant 0 : index
    %c0_88 = arith.constant 0 : index
    %249 = vector.load %arg15[%c0_87, %c0_88] : memref<1x4xf32, #tpu.memory_space<vmem>>, vector<1x4xf32>
    %250 = vector.broadcast %249 : vector<1x4xf32> to vector<6x4xf32>
    %251 = arith.addf %248, %250 : vector<6x4xf32>
    %cst_89 = arith.constant 2.000000e+01 : f32
    %252 = vector.broadcast %cst_89 : f32 to vector<6x4xf32>
    %253 = arith.cmpf ogt, %251, %252 : vector<6x4xf32>
    %254 = math.exp %251 : vector<6x4xf32>
    %255 = math.log1p %254 : vector<6x4xf32>
    %256 = arith.select %253, %251, %255 : vector<6x4xi1>, vector<6x4xf32>
    %c0_90 = arith.constant 0 : index
    %c0_91 = arith.constant 0 : index
    %257 = vector.load %arg16[%c0_90, %c0_91] : memref<12x128xf32, #tpu.memory_space<vmem>>, vector<12x128xf32>
    %258 = vector.extract_strided_slice %257 {offsets = [0, 0], sizes = [4, 128], strides = [1, 1]} : vector<12x128xf32> to vector<4x128xf32>
    %cst_92 = arith.constant dense<0.000000e+00> : vector<6x128xf32>
    %259 = tpu.matmul %256, %258, %cst_92 {dimension_numbers = #tpu.dot_dimension_numbers<[1], [0], [0], [1], [0, 0, 1, 1], [], []>} : vector<6x4xf32>, vector<4x128xf32>, vector<6x128xf32> -> vector<6x128xf32>
    %260 = vector.extract_strided_slice %256 {offsets = [1, 0], sizes = [5, 4], strides = [1, 1]} : vector<6x4xf32> to vector<5x4xf32>
    %cst_93 = arith.constant 0.000000e+00 : f32
    %261 = vector.broadcast %cst_93 : f32 to vector<1x4xf32>
    %262 = tpu.concatenate %260, %261 in 0 : vector<5x4xf32>, vector<1x4xf32> -> vector<6x4xf32>
    %263 = vector.extract_strided_slice %257 {offsets = [4, 0], sizes = [4, 128], strides = [1, 1]} : vector<12x128xf32> to vector<4x128xf32>
    %cst_94 = arith.constant dense<0.000000e+00> : vector<6x128xf32>
    %264 = tpu.matmul %262, %263, %cst_94 {dimension_numbers = #tpu.dot_dimension_numbers<[1], [0], [0], [1], [0, 0, 1, 1], [], []>} : vector<6x4xf32>, vector<4x128xf32>, vector<6x128xf32> -> vector<6x128xf32>
    %265 = arith.addf %259, %264 : vector<6x128xf32>
    %266 = vector.extract_strided_slice %256 {offsets = [2, 0], sizes = [4, 4], strides = [1, 1]} : vector<6x4xf32> to vector<4x4xf32>
    %cst_95 = arith.constant 0.000000e+00 : f32
    %267 = vector.broadcast %cst_95 : f32 to vector<2x4xf32>
    %268 = tpu.concatenate %266, %267 in 0 : vector<4x4xf32>, vector<2x4xf32> -> vector<6x4xf32>
    %269 = vector.extract_strided_slice %257 {offsets = [8, 0], sizes = [4, 128], strides = [1, 1]} : vector<12x128xf32> to vector<4x128xf32>
    %cst_96 = arith.constant dense<0.000000e+00> : vector<6x128xf32>
    %270 = tpu.matmul %268, %269, %cst_96 {dimension_numbers = #tpu.dot_dimension_numbers<[1], [0], [0], [1], [0, 0, 1, 1], [], []>} : vector<6x4xf32>, vector<4x128xf32>, vector<6x128xf32> -> vector<6x128xf32>
    %271 = arith.addf %265, %270 : vector<6x128xf32>
    %c0_97 = arith.constant 0 : index
    %c0_98 = arith.constant 0 : index
    %272 = vector.load %arg17[%c0_97, %c0_98] : memref<1x128xf32, #tpu.memory_space<vmem>>, vector<1x128xf32>
    %273 = vector.broadcast %272 : vector<1x128xf32> to vector<6x128xf32>
    %274 = arith.addf %271, %273 : vector<6x128xf32>
    %c0_99 = arith.constant 0 : index
    %c0_100 = arith.constant 0 : index
    %275 = vector.load %arg18[%c0_99, %c0_100] : memref<6x128xf32, #tpu.memory_space<vmem>>, vector<6x128xf32>
    tpu.vector_store %arg18[%c0_99, %c0_100], %274 {strides = array<i32>} : memref<6x128xf32, #tpu.memory_space<vmem>>, vector<6x128xf32>,
    return
  }
}

</mosaic_0001>

<bundles_post_ra>
// kernel: tpu_custom_call.1
= control target key start
LH: loop header
LB: loop body
LE: loop exit
PB: predicated region body
PF: predicated region fallthrough
CT: control target
= control target key end

     0   :  { %s2799_s0 = inlined_call_operand.vmem [shape: f32[6,1], index: 0, kind: input, shape index: {}]   ;;  %s2800_s1 = inlined_call_operand.vmem [shape: f32[3,64], index: 1, kind: input, shape index: {}]   ;;  %s2801_s2 = inlined_call_operand.vmem [shape: f32[1,64], index: 2, kind: input, shape index: {}]   ;;  %s2802_s3 = inlined_call_operand.vmem [shape: f32[1,64], index: 3, kind: input, shape index: {}]   ;;  %s2803_s4 = inlined_call_operand.vmem [shape: f32[192,128], index: 4, kind: input, shape index: {}]   ;;  %s2804_s5 = inlined_call_operand.vmem [shape: f32[1,128], index: 5, kind: input, shape index: {}]   ;;  %s2805_s6 = inlined_call_operand.vmem [shape: f32[1,128], index: 6, kind: input, shape index: {}]   ;;  %s2806_s7 = inlined_call_operand.vmem [shape: f32[384,64], index: 7, kind: input, shape index: {}]   ;;  %s2807_s8 = inlined_call_operand.vmem [shape: f32[1,64], index: 8, kind: input, shape index: {}]   ;;  %s2808_s9 = inlined_call_operand.vmem [shape: f32[1,64], index: 9, kind: input, shape index: {}]   ;;  %s2809_s10 = inlined_call_operand.vmem [shape: f32[192,32], index: 10, kind: input, shape index: {}]   ;;  %s2810_s11 = inlined_call_operand.vmem [shape: f32[1,32], index: 11, kind: input, shape index: {}]   ;;  %s2811_s12 = inlined_call_operand.vmem [shape: f32[1,32], index: 12, kind: input, shape index: {}]   ;;  %s2812_s13 = inlined_call_operand.vmem [shape: f32[96,4], index: 13, kind: input, shape index: {}]   ;;  %s2813_s14 = inlined_call_operand.vmem [shape: f32[1,4], index: 14, kind: input, shape index: {}]   ;;  %s2814_s15 = inlined_call_operand.vmem [shape: f32[1,4], index: 15, kind: input, shape index: {}]   ;;  %s2815_s16 = inlined_call_operand.vmem [shape: f32[12,128], index: 16, kind: input, shape index: {}]   ;;  %s2816_s17 = inlined_call_operand.vmem [shape: f32[1,128], index: 17, kind: input, shape index: {}]   ;;  %s2817_s18 = inlined_call_operand.hbm [shape: f32[6,128], index: 18, kind: output, shape index: {}]  }
   0x1   :  { %2818 = sst [smem:[#allocation5_spill]] %s2799_s0 }
   0x2   :  { %2819 = sst [smem:[#allocation6_spill]] %s2800_s1 }
   0x3   :  { %2820 = sst [smem:[#allocation7_spill]] %s2801_s2 }
   0x4   :  { %v60_v0 = vlaneseq  ;;  %v2121_v1 = vmov 0  }
   0x5   :  { %2067 = vset.pattern.permute.xlu0 %v2121_v1  ;;  %2068 = vset.pattern.permute.xlu1 %v2121_v1 }
   0x6   :  { %v2221_v2 = vshrl.u32 %v60_v0, 7 }
   0x7   :  { %23 = vsyncpa [#allocation3], 0  ;;  %s2821_s29 = sld [smem:[#allocation5_spill]]  ;;  %vm87_vm0 = vcmask 1040384   ;;  %vm92_vm1 = vcmask 1044480   ;;  %v2122_v15 = vmov 1.0  }
   0x8   :  { %v2224_v3 = vmul.u32.u64.low 2863311531, %v2221_v2  ;;  %v2225_v4 = vmul.u32.u64.high 2863311531, %v2221_v2, %v2224_v3  ;;  %v190_v20 = vld [vmem:[%s2803_s4 + $0x78] sm:$0xff]  ;;  %v2123_v21 = vmov 0.0   ;;  %v189_v22 = vld [vmem:[%s2803_s4 + $0x70] sm:$0xff]  ;;  %v188_v25 = vld [vmem:[%s2803_s4 + $0x68] sm:$0xff] }
   0x9   :  { %1793 = vmatprep.subr.mxu0 %v2123_v21  ;;  %1812 = vmatprep.subr.mxu1 %v2123_v21  ;;  %v182_v23 = vld [vmem:[%s2803_s4 + $0x38] sm:$0xff]  ;;  %v181_v24 = vld [vmem:[%s2803_s4 + $0x30] sm:$0xff]  ;;  %v180_v26 = vld [vmem:[%s2803_s4 + $0x28] sm:$0xff]  ;;  %vm2124_vm7 = vmmov 0   ;;  %v2311_v37 = vsub.s32 0, %v2221_v2  ;;  %v111_v38 = vsub.s32 1, %v2221_v2 }
   0xa   :  { %v68_v5 = vshrl.u32 %v2225_v4, 1  ;;  %1794 = vmatpush3.msra.mxu0 %v190_v20  ;;  %1813 = vmatpush3.msra.mxu1 %v182_v23  ;;  %v187_v27 = vld [vmem:[%s2803_s4 + $0x60] sm:$0xff]  ;;  %v186_v29 = vld [vmem:[%s2803_s4 + $0x58] sm:$0xff]  ;;  %v185_v31 = vld [vmem:[%s2803_s4 + $0x50] sm:$0xff]  ;;  %v122_v39 = vsub.s32 2, %v2221_v2  ;;  %s2822_s20 = sld [smem:[#allocation6_spill]] }
   0xb   :  { %1795 = vmatprep.subr.mxu0 %v2123_v21  ;;  %1814 = vmatprep.subr.mxu1 %v2123_v21  ;;  %v179_v28 = vld [vmem:[%s2803_s4 + $0x20] sm:$0xff]  ;;  %v178_v30 = vld [vmem:[%s2803_s4 + $0x18] sm:$0xff]  ;;  %v184_v32 = vld [vmem:[%s2803_s4 + $0x48] sm:$0xff]  ;;  %vm126_vm8 = vcmask 521216   ;;  %s2823_s2 = sld [smem:[#allocation7_spill]]  ;;  %vm208_vm10 = vcmask 523264  }
   0xc   :  { %v69_v7 = vmul.u32 3, %v68_v5  ;;  %1796 = vmatpush3.msra.mxu0 %v189_v22  ;;  %1815 = vmatpush3.msra.mxu1 %v181_v24  ;;  %v183_v33 = vld [vmem:[%s2803_s4 + $0x40] sm:$0xff]  ;;  %v177_v34 = vld [vmem:[%s2803_s4 + $0x10] sm:$0xff]  ;;  %v176_v35 = vld [vmem:[%s2803_s4 + $0x8] sm:$0xff]  ;;  %vm428_vm12 = vcmask 1045504  }
   0xd   :  { %v82_v6 = vld [vmem:[%s2821_s29] sm:$0x3f]  ;;  %1797 = vmatprep.subr.mxu0 %v2123_v21  ;;  %1816 = vmatprep.subr.mxu1 %v2123_v21 }
   0xe   :  { %v70_v8 = vsub.s32 %v2221_v2, %v69_v7  ;;  %v85_v9 = vrot.slane %v82_v6, 7  ;;  %v90_v10 = vrot.slane %v82_v6, 1  ;;  %1798 = vmatpush3.msra.mxu0 %v188_v25  ;;  %1817 = vmatpush3.msra.mxu1 %v180_v26  ;;  %v175_v36 = vld [vmem:[%s2803_s4] sm:$0xff] }
   0xf   :  { %1799 = vmatprep.subr.mxu0 %v2123_v21  ;;  %1818 = vmatprep.subr.mxu1 %v2123_v21 }
  0x10   :  { %vm73_vm2 = vcmp.ne.s32.totalorder %v70_v8, 0  ;;  %vm74_vm3 = vcmp.lt.s32.totalorder %v70_v8, 0  ;;  %v76_v11 = vadd.s32 3, %v70_v8  ;;  %v88_v13 = vsel %vm87_vm0, 0.0, %v85_v9  ;;  %1800 = vmatpush3.msra.mxu0 %v187_v27  ;;  %1819 = vmatpush3.msra.mxu1 %v179_v28  ;;  %v83_v40 = vld [vmem:[%s2822_s20] sm:$0x7] }
  0x11   :  { %vm75_vm4 = vmand %vm74_vm3, %vm73_vm2  ;;  %v93_v14 = vsel %vm92_vm1, %v90_v10, 0.0  ;;  %1801 = vmatprep.subr.mxu0 %v2123_v21  ;;  %1820 = vmatprep.subr.mxu1 %v2123_v21  ;;  %v103_v42 = vrot.slane %v83_v40, %v2311_v37  ;;  %v112_v43 = vrot.slane %v83_v40, %v111_v38  ;;  %v123_v44 = vrot.slane %v83_v40, %v122_v39  ;;  %v147_v7 = vld [vmem:[%s2823_s2] sm:$0x1]  ;;  %v198_v27 = vld [vmem:[%s2803_s4 + $0xb8] sm:$0xff] }
  0x12   :  { %v77_v12 = vsel %vm75_vm4, %v76_v11, %v70_v8  ;;  %1802 = vmatpush3.msra.mxu0 %v186_v29  ;;  %1821 = vmatpush3.msra.mxu1 %v178_v30  ;;  %v1646_v11 = vld [vmem:[%s2802_s3] ss:$0 sm:$0xff]  ;;  %v197_v30 = vld [vmem:[%s2803_s4 + $0xb0] sm:$0xff]  ;;  %v192_v39 = vld [vmem:[%s2803_s4 + $0x88] sm:$0xff]  ;;  %vm1045_vm3 = vcmask 259072  }
  0x13   :  { %vm78_vm5 = vcmp.eq.s32.totalorder %v77_v12, 0  ;;  %vm80_vm6 = vcmp.eq.s32.totalorder %v77_v12, 2  ;;  %1803 = vmatprep.subr.mxu0 %v2123_v21  ;;  %1809 = vmatprep.mubr.msk.f32.mxu0 %vm2124_vm7, %v2123_v21  ;;  %v193_v38 = vld [vmem:[%s2803_s4 + $0x90] sm:$0xff] }
  0x14   :  { %v2234_v16 = vsel %vm78_vm5, 0.0, %v2122_v15  ;;  %v2236_v17 = vsel %vm80_vm6, 0.0, %v2122_v15  ;;  %1804 = vmatpush3.msra.mxu0 %v185_v31  ;;  %1822 = vmatprep.subr.mxu1 %v2123_v21  ;;  %vm1115_vm5 = vcmask 261120  }
  0x15   :  { %v89_v18 = vmul.f32 %v88_v13, %v2234_v16  ;;  %v94_v19 = vmul.f32 %v93_v14, %v2236_v17  ;;  %1805 = vmatprep.subr.mxu0 %v2123_v21  ;;  %1828 = vmatprep.mubr.msk.f32.mxu1 %vm2124_vm7, %v2123_v21 }
  0x16   :  { %1806 = vmatpush3.msra.mxu0 %v184_v32  ;;  %1823 = vmatpush3.msra.mxu1 %v177_v34  ;;  %v196_v32 = vld [vmem:[%s2803_s4 + $0xa8] sm:$0xff]  ;;  %v195_v34 = vld [vmem:[%s2803_s4 + $0xa0] sm:$0xff] }
  0x17   :  { %97 = vperm.xlu0 %2067, %v89_v18   ;;  %117 = vperm.xlu1 %2068, %v94_v19  }
  0x18   :  { %1807 = vmatprep.subr.mxu0 %v2123_v21  ;;  %1824 = vmatprep.subr.mxu1 %v2123_v21 }
  0x19   :  { %1808 = vmatpush3.msra.mxu0 %v183_v33  ;;  %1825 = vmatpush3.msra.mxu1 %v176_v35  ;;  %v194_v35 = vld [vmem:[%s2803_s4 + $0x98] sm:$0xff] }
  0x1a   :  { %1831 = vmatprep.subr.mxu0 %v2123_v21  ;;  %1826 = vmatprep.subr.mxu1 %v2123_v21 }
  0x1b   :  { %106 = vperm.xlu0 %2067, %v82_v6   ;;  %1827 = vmatpush3.msra.mxu1 %v175_v36 }
  0x1c   :  { %1850 = vmatprep.subr.mxu1 %v2123_v21 }
  0x92   :  { %v98_v41 = vpop.permute.xlu0 %97  ;;  %v118_v45 = vpop.permute.xlu1 %117 }
  0x93   :  { %v104_v47 = vmul.f32 %v103_v42, %v98_v41  ;;  %v124_v49 = vmul.f32 %v123_v44, %v118_v45  ;;  %v191_v41 = vld [vmem:[%s2803_s4 + $0x80] sm:$0xff]  ;;  %v507_v44 = vld [vmem:[%s2806_s7 + $0xf0] sm:$0xff]  ;;  %v492_v45 = vld [vmem:[%s2806_s7 + $0x78] sm:$0xff] }
  0x96   :  { %v107_v46 = vpop.permute.xlu0 %106 }
  0x97   :  { %v113_v48 = vmul.f32 %v112_v43, %v107_v46  ;;  %v508_v43 = vld [vmem:[%s2806_s7 + $0xf8] sm:$0xff]  ;;  %v506_v46 = vld [vmem:[%s2806_s7 + $0xe8] sm:$0xff] }
  0x99   :  { %v114_v50 = vadd.f32 %v113_v48, %v104_v47  ;;  %v491_v47 = vld [vmem:[%s2806_s7 + $0x70] sm:$0xff]  ;;  %v490_v48 = vld [vmem:[%s2806_s7 + $0x68] sm:$0xff] }
  0x9b   :  { %v125_v51 = vadd.f32 %v124_v49, %v114_v50  ;;  %v505_v49 = vld [vmem:[%s2806_s7 + $0xe0] sm:$0xff] }
  0x9c   :  { %v489_v50 = vld [vmem:[%s2806_s7 + $0x60] sm:$0xff] }
  0x9d   :  { %v127_v52 = vsel %vm126_vm8, %v125_v51, 0.0 }
  0x9e   :  { %v128_v53 = vrot.slane %v127_v52, 4 }
  0xa0   :  { %v129_v54 = vadd.f32 %v128_v53, %v127_v52  ;;  %v488_v52 = vld [vmem:[%s2806_s7 + $0x58] sm:$0xff]  ;;  %v503_v53 = vld [vmem:[%s2806_s7 + $0xd0] sm:$0xff] }
  0xa2   :  { %v130_v55 = vrot.slane %v129_v54, 2 }
  0xa4   :  { %v131_v56 = vadd.f32 %v130_v55, %v129_v54  ;;  %v487_v54 = vld [vmem:[%s2806_s7 + $0x50] sm:$0xff]  ;;  %v502_v55 = vld [vmem:[%s2806_s7 + $0xc8] sm:$0xff] }
  0xa6   :  { %v132_v57 = vrot.slane %v131_v56, 1 }
  0xa8   :  { %v133_v58 = vadd.f32 %v132_v57, %v131_v56  ;;  %v486_v56 = vld [vmem:[%s2806_s7 + $0x48] sm:$0xff]  ;;  %v501_v57 = vld [vmem:[%s2806_s7 + $0xc0] sm:$0xff] }
  0xaa   :  { %v134_v59 = vmul.f32 0.16666667, %v133_v58  ;;  %v485_v58 = vld [vmem:[%s2806_s7 + $0x40] sm:$0xff] }
  0xac   :  { %v135_v60 = vsub.f32 %v125_v51, %v134_v59  ;;  %v504_v51 = vld [vmem:[%s2806_s7 + $0xd8] sm:$0xff] }
  0xad   :  { %v500_v59 = vld [vmem:[%s2806_s7 + $0xb8] sm:$0xff] }
  0xae   :  { %v136_v61 = vmul.f32 %v135_v60, %v135_v60 }
  0xb0   :  { %v137_v62 = vsel %vm126_vm8, %v136_v61, 0.0  ;;  %v499_v61 = vld [vmem:[%s2806_s7 + $0xb0] sm:$0xff] }
  0xb1   :  { %v138_v63 = vrot.slane %v137_v62, 4 }
  0xb3   :  { %v139_v0 = vadd.f32 %v138_v63, %v137_v62  ;;  %v483_v62 = vld [vmem:[%s2806_s7 + $0x30] sm:$0xff]  ;;  %v498_v63 = vld [vmem:[%s2806_s7 + $0xa8] sm:$0xff] }
  0xb5   :  { %v140_v1 = vrot.slane %v139_v0, 2 }
  0xb7   :  { %v141_v2 = vadd.f32 %v140_v1, %v139_v0  ;;  %v482_v0 = vld [vmem:[%s2806_s7 + $0x28] sm:$0xff]  ;;  %v497_v1 = vld [vmem:[%s2806_s7 + $0xa0] sm:$0xff] }
  0xb9   :  { %v142_v3 = vrot.slane %v141_v2, 1 }
  0xbb   :  { %v143_v4 = vadd.f32 %v142_v3, %v141_v2  ;;  %v481_v2 = vld [vmem:[%s2806_s7 + $0x20] sm:$0xff]  ;;  %v496_v3 = vld [vmem:[%s2806_s7 + $0x98] sm:$0xff] }
  0xbd   :  { %v144_v5 = vmul.f32 0.16666667, %v143_v4  ;;  %v480_v4 = vld [vmem:[%s2806_s7 + $0x18] sm:$0xff] }
  0xbf   :  { %v145_v6 = vadd.f32 1e-05, %v144_v5  ;;  %v495_v5 = vld [vmem:[%s2806_s7 + $0x90] sm:$0xff] }
  0xc1   :  { %2069 = vrsqrt.f32 %v145_v6  ;;  %v494_v6 = vld [vmem:[%s2806_s7 + $0x88] sm:$0xff] }
  0xce   :  { %v2070_v8 = vpop.eup %2069 }
  0xcf   :  { %v148_v9 = vmul.f32 %v2070_v8, %v147_v7  ;;  %v493_v7 = vld [vmem:[%s2806_s7 + $0x80] sm:$0xff]  ;;  %v479_v8 = vld [vmem:[%s2806_s7 + $0x10] sm:$0xff] }
  0xd1   :  { %v152_v10 = vrot.slane %v148_v9, %v2311_v37  ;;  %v478_v9 = vld [vmem:[%s2806_s7 + $0x8] sm:$0xff] }
  0xd3   :  { %v153_v12 = vmul.f32 %v152_v10, %v135_v60  ;;  %v484_v60 = vld [vmem:[%s2806_s7 + $0x38] sm:$0xff]  ;;  %v477_v10 = vld [vmem:[%s2806_s7] sm:$0xff] }
  0xd5   :  { %v161_v13 = vadd.f32 %v1646_v11, %v153_v12 }
  0xd7   :  { %v163_v14 = vmul.f32 1.442695, %v161_v13  ;;  %vm162_vm11 = vcmp.gt.f32.partialorder %v161_v13, 20.0 }
  0xd9   :  { %2071 = vpow2.f32 %v163_v14 }
  0xe6   :  { %v2072_v15 = vpop.eup %2071 }
  0xe7   :  { %v165_v18 = vadd.f32 1.0, %v2072_v15  ;;  %v168_v19 = vmul.f32 -0.5, %v2072_v15  ;;  %v171_v22 = vand.u32 2147483647, %v2072_v15 }
  0xe9   :  { %2073 = vlog2.f32 %v165_v18  ;;  %v169_v20 = vadd.f32 1.0, %v168_v19  ;;  %vm172_vm9 = vcmp.lt.f32.partialorder %v171_v22, 0.0004427343 }
  0xeb   :  { %v170_v25 = vmul.f32 %v2072_v15, %v169_v20 }
  0xf6   :  { %v2074_v23 = vpop.eup %2073 }
  0xf7   :  { %v167_v24 = vmul.f32 0.6931472, %v2074_v23 }
  0xf9   :  { %v173_v26 = vsel %vm172_vm9, %v170_v25, %v167_v24 }
  0xfa   :  { %v174_v28 = vsel %vm162_vm11, %v161_v13, %v173_v26  ;;  %vm1392_vm11 = vcmask 31744  }
  0xfb   :  { %v200_v29 = vrot.slane %v174_v28, 7  ;;  %1810 = vmatmul.mubr.msk.f32.vlgmr.msra.gmra.mxu0 %vm208_vm10, %v174_v28  ;;  %v204_v36 = vrot.slane %v174_v28, 1 }
  0xfc   :  { %1832 = vmatpush3.msra.mxu0 %v198_v27  ;;  %1847 = vmatprep.mubr.msk.f32.mxu0 %vm2124_vm7, %v2123_v21 }
  0xfd   :  { %v202_v31 = vsel %vm87_vm0, 0.0, %v200_v29  ;;  %1833 = vmatprep.subr.mxu0 %v2123_v21  ;;  %v206_v40 = vsel %vm92_vm1, %v204_v36, 0.0 }
  0xfe   :  { %1834 = vmatpush3.msra.mxu0 %v197_v30  ;;  %v203_v33 = vmul.f32 %v202_v31, %v2234_v16  ;;  %v207_v42 = vmul.f32 %v206_v40, %v2236_v17 }
  0xff   :  { %1835 = vmatprep.subr.mxu0 %v2123_v21 }
 0x100   :  { %1836 = vmatpush3.msra.mxu0 %v196_v32  ;;  %1829 = vmatmul.mubr.msk.f32.vlgmr.msra.gmra.mxu1 %vm208_vm10, %v203_v33 }
 0x101   :  { %1837 = vmatprep.subr.mxu0 %v2123_v21  ;;  %1882 = vmatprep.mubr.msk.f32.mxu1 %vm2124_vm7, %v2123_v21 }
 0x102   :  { %1838 = vmatpush3.msra.mxu0 %v195_v34  ;;  %1851 = vmatpush3.msra.mxu1 %v508_v43 }
 0x103   :  { %1839 = vmatprep.subr.mxu0 %v2123_v21  ;;  %1852 = vmatprep.subr.mxu1 %v2123_v21 }
 0x104   :  { %1840 = vmatpush3.msra.mxu0 %v194_v35  ;;  %1853 = vmatpush3.msra.mxu1 %v507_v44 }
 0x105   :  { %1841 = vmatprep.subr.mxu0 %v2123_v21  ;;  %1854 = vmatprep.subr.mxu1 %v2123_v21 }
 0x106   :  { %1842 = vmatpush3.msra.mxu0 %v193_v38  ;;  %1855 = vmatpush3.msra.mxu1 %v506_v46  ;;  %v1650_v46 = vld [vmem:[%s2805_s6] ss:$0 sm:$0xff] }
 0x107   :  { %1843 = vmatprep.subr.mxu0 %v2123_v21  ;;  %1856 = vmatprep.subr.mxu1 %v2123_v21 }
 0x108   :  { %1844 = vmatpush3.msra.mxu0 %v192_v39  ;;  %1857 = vmatpush3.msra.mxu1 %v505_v49 }
 0x109   :  { %1845 = vmatprep.subr.mxu0 %v2123_v21  ;;  %1858 = vmatprep.subr.mxu1 %v2123_v21 }
 0x10a   :  { %1846 = vmatpush3.msra.mxu0 %v191_v41  ;;  %1859 = vmatpush3.msra.mxu1 %v504_v51 }
 0x10b   :  { %1848 = vmatmul.mubr.msk.f32.vlgmr.msra.gmra.mxu0 %vm208_vm10, %v207_v42  ;;  %1885 = vmatprep.subr.mxu0 %v2123_v21  ;;  %v449_v42 = vld [vmem:[%s2804_s5] sm:$0x1] }
 0x10c   :  { %1917 = vmatprep.mubr.msk.f32.mxu0 %vm2124_vm7, %v2123_v21  ;;  %1886 = vmatpush3.msra.mxu0 %v492_v45 }
 0x10d   :  { %1887 = vmatprep.subr.mxu0 %v2123_v21  ;;  %1860 = vmatprep.subr.mxu1 %v2123_v21 }
 0x10e   :  { %1888 = vmatpush3.msra.mxu0 %v491_v47  ;;  %1861 = vmatpush3.msra.mxu1 %v503_v53 }
 0x10f   :  { %1889 = vmatprep.subr.mxu0 %v2123_v21  ;;  %1862 = vmatprep.subr.mxu1 %v2123_v21 }
 0x110   :  { %1890 = vmatpush3.msra.mxu0 %v490_v48  ;;  %1863 = vmatpush3.msra.mxu1 %v502_v55 }
 0x111   :  { %1891 = vmatprep.subr.mxu0 %v2123_v21  ;;  %1864 = vmatprep.subr.mxu1 %v2123_v21 }
 0x112   :  { %1892 = vmatpush3.msra.mxu0 %v489_v50  ;;  %1865 = vmatpush3.msra.mxu1 %v501_v57 }
 0x113   :  { %1893 = vmatprep.subr.mxu0 %v2123_v21  ;;  %1866 = vmatprep.subr.mxu1 %v2123_v21 }
 0x114   :  { %1894 = vmatpush3.msra.mxu0 %v488_v52  ;;  %1867 = vmatpush3.msra.mxu1 %v500_v59  ;;  %v524_v59 = vld [vmem:[%s2806_s7 + $0x178] sm:$0xff] }
 0x115   :  { %1895 = vmatprep.subr.mxu0 %v2123_v21  ;;  %1868 = vmatprep.subr.mxu1 %v2123_v21 }
 0x116   :  { %1896 = vmatpush3.msra.mxu0 %v487_v54  ;;  %1869 = vmatpush3.msra.mxu1 %v499_v61 }
 0x117   :  { %1897 = vmatprep.subr.mxu0 %v2123_v21  ;;  %1870 = vmatprep.subr.mxu1 %v2123_v21 }
 0x118   :  { %1898 = vmatpush3.msra.mxu0 %v486_v56  ;;  %1871 = vmatpush3.msra.mxu1 %v498_v63 }
 0x119   :  { %1899 = vmatprep.subr.mxu0 %v2123_v21  ;;  %1872 = vmatprep.subr.mxu1 %v2123_v21 }
 0x11a   :  { %1900 = vmatpush3.msra.mxu0 %v485_v58  ;;  %1873 = vmatpush3.msra.mxu1 %v497_v1 }
 0x11b   :  { %1901 = vmatprep.subr.mxu0 %v2123_v21  ;;  %1874 = vmatprep.subr.mxu1 %v2123_v21 }
 0x11c   :  { %1902 = vmatpush3.msra.mxu0 %v484_v60  ;;  %1875 = vmatpush3.msra.mxu1 %v496_v3  ;;  %v520_v3 = vld [vmem:[%s2806_s7 + $0x158] sm:$0xff] }
 0x11d   :  { %1903 = vmatprep.subr.mxu0 %v2123_v21  ;;  %1876 = vmatprep.subr.mxu1 %v2123_v21 }
 0x11e   :  { %1904 = vmatpush3.msra.mxu0 %v483_v62  ;;  %1877 = vmatpush3.msra.mxu1 %v495_v5  ;;  %v523_v62 = vld [vmem:[%s2806_s7 + $0x170] sm:$0xff]  ;;  %v518_v5 = vld [vmem:[%s2806_s7 + $0x148] sm:$0xff] }
 0x11f   :  { %1905 = vmatprep.subr.mxu0 %v2123_v21  ;;  %1878 = vmatprep.subr.mxu1 %v2123_v21 }
 0x120   :  { %1906 = vmatpush3.msra.mxu0 %v482_v0  ;;  %1879 = vmatpush3.msra.mxu1 %v494_v6  ;;  %v522_v0 = vld [vmem:[%s2806_s7 + $0x168] sm:$0xff]  ;;  %v517_v6 = vld [vmem:[%s2806_s7 + $0x140] sm:$0xff] }
 0x121   :  { %1907 = vmatprep.subr.mxu0 %v2123_v21  ;;  %1880 = vmatprep.subr.mxu1 %v2123_v21 }
 0x122   :  { %1908 = vmatpush3.msra.mxu0 %v481_v2  ;;  %1881 = vmatpush3.msra.mxu1 %v493_v7  ;;  %v521_v2 = vld [vmem:[%s2806_s7 + $0x160] sm:$0xff]  ;;  %v516_v7 = vld [vmem:[%s2806_s7 + $0x138] sm:$0xff] }
 0x123   :  { %1909 = vmatprep.subr.mxu0 %v2123_v21  ;;  %1920 = vmatprep.subr.mxu1 %v2123_v21 }
 0x124   :  { %1910 = vmatpush3.msra.mxu0 %v480_v4  ;;  %v519_v4 = vld [vmem:[%s2806_s7 + $0x150] sm:$0xff] }
 0x125   :  { %1911 = vmatprep.subr.mxu0 %v2123_v21 }
 0x126   :  { %1912 = vmatpush3.msra.mxu0 %v479_v8  ;;  %v515_v8 = vld [vmem:[%s2806_s7 + $0x130] sm:$0xff] }
 0x127   :  { %1913 = vmatprep.subr.mxu0 %v2123_v21 }
 0x128   :  { %1914 = vmatpush3.msra.mxu0 %v478_v9  ;;  %v514_v9 = vld [vmem:[%s2806_s7 + $0x128] sm:$0xff] }
 0x129   :  { %1915 = vmatprep.subr.mxu0 %v2123_v21 }
 0x12a   :  { %1916 = vmatpush3.msra.mxu0 %v477_v10  ;;  %v513_v10 = vld [vmem:[%s2806_s7 + $0x120] sm:$0xff] }
 0x12b   :  { %1955 = vmatprep.subr.mxu0 %v2123_v21 }
 0x1bb   :  { %v277_v11 = vpop.f32.mrf.mxu0 }
 0x1bd   :  { %v1811_v12 = vpop.f32.mrf.mxu0 }
 0x1c0   :  { %v350_v13 = vpop.f32.mrf.mxu1 }
 0x1c1   :  { %v351_v15 = vadd.f32 %v350_v13, %v277_v11  ;;  %v512_v11 = vld [vmem:[%s2806_s7 + $0x118] sm:$0xff]  ;;  %v511_v13 = vld [vmem:[%s2806_s7 + $0x110] sm:$0xff] }
 0x1c2   :  { %v1830_v14 = vpop.f32.mrf.mxu1 }
 0x1c3   :  { %v510_v14 = vld [vmem:[%s2806_s7 + $0x108] sm:$0xff] }
 0x1cb   :  { %v423_v18 = vpop.f32.mrf.mxu0 }
 0x1cc   :  { %v427_v19 = vadd.f32 %v423_v18, %v351_v15  ;;  %v509_v18 = vld [vmem:[%s2806_s7 + $0x100] sm:$0xff] }
 0x1cd   :  { %v1849_v20 = vpop.f32.mrf.mxu0 }
 0x1ce   :  { %v429_v22 = vsel %vm428_vm12, %v427_v19, 0.0  ;;  %v808_v20 = vld [vmem:[%s2809_s10 + $0x78] sm:$0xff] }
 0x1cf   :  { %v430_v23 = vrot.slane %v429_v22, 4 }
 0x1d1   :  { %v431_v24 = vadd.f32 %v430_v23, %v429_v22  ;;  %v807_v22 = vld [vmem:[%s2809_s10 + $0x70] sm:$0xff]  ;;  %v816_v23 = vld [vmem:[%s2809_s10 + $0xb8] sm:$0xff] }
 0x1d3   :  { %v432_v25 = vrot.slane %v431_v24, 2 }
 0x1d5   :  { %v433_v26 = vadd.f32 %v432_v25, %v431_v24  ;;  %v806_v24 = vld [vmem:[%s2809_s10 + $0x68] sm:$0xff]  ;;  %v815_v25 = vld [vmem:[%s2809_s10 + $0xb0] sm:$0xff] }
 0x1d7   :  { %v434_v27 = vrot.slane %v433_v26, 1 }
 0x1d9   :  { %v435_v28 = vadd.f32 %v434_v27, %v433_v26  ;;  %v814_v26 = vld [vmem:[%s2809_s10 + $0xa8] sm:$0xff]  ;;  %v805_v27 = vld [vmem:[%s2809_s10 + $0x60] sm:$0xff] }
 0x1db   :  { %v436_v29 = vmul.f32 0.16666667, %v435_v28  ;;  %v813_v28 = vld [vmem:[%s2809_s10 + $0xa0] sm:$0xff] }
 0x1dd   :  { %v437_v30 = vsub.f32 %v427_v19, %v436_v29  ;;  %v804_v29 = vld [vmem:[%s2809_s10 + $0x58] sm:$0xff] }
 0x1df   :  { %v438_v31 = vmul.f32 %v437_v30, %v437_v30 }
 0x1e1   :  { %v439_v32 = vsel %vm428_vm12, %v438_v31, 0.0  ;;  %v803_v31 = vld [vmem:[%s2809_s10 + $0x50] sm:$0xff] }
 0x1e2   :  { %v440_v33 = vrot.slane %v439_v32, 4 }
 0x1e4   :  { %v441_v34 = vadd.f32 %v440_v33, %v439_v32  ;;  %v802_v32 = vld [vmem:[%s2809_s10 + $0x48] sm:$0xff]  ;;  %v801_v33 = vld [vmem:[%s2809_s10 + $0x40] sm:$0xff] }
 0x1e6   :  { %v442_v35 = vrot.slane %v441_v34, 2 }
 0x1e8   :  { %v443_v36 = vadd.f32 %v442_v35, %v441_v34  ;;  %v811_v35 = vld [vmem:[%s2809_s10 + $0x90] sm:$0xff] }
 0x1ea   :  { %v444_v38 = vrot.slane %v443_v36, 1 }
 0x1ec   :  { %v445_v39 = vadd.f32 %v444_v38, %v443_v36  ;;  %v810_v38 = vld [vmem:[%s2809_s10 + $0x88] sm:$0xff] }
 0x1ee   :  { %v446_v40 = vmul.f32 0.16666667, %v445_v39 }
 0x1f0   :  { %v447_v41 = vadd.f32 1e-05, %v446_v40  ;;  %v809_v40 = vld [vmem:[%s2809_s10 + $0x80] sm:$0xff] }
 0x1f2   :  { %2075 = vrsqrt.f32 %v447_v41 }
 0x1ff   :  { %v2076_v43 = vpop.eup %2075 }
 0x200   :  { %v450_v44 = vmul.f32 %v2076_v43, %v449_v42 }
 0x202   :  { %v454_v45 = vrot.slane %v450_v44, %v2311_v37 }
 0x204   :  { %v455_v47 = vmul.f32 %v454_v45, %v437_v30  ;;  %v812_v30 = vld [vmem:[%s2809_s10 + $0x98] sm:$0xff] }
 0x206   :  { %v463_v48 = vadd.f32 %v1650_v46, %v455_v47 }
 0x208   :  { %v465_v49 = vmul.f32 1.442695, %v463_v48  ;;  %vm464_vm14 = vcmp.gt.f32.partialorder %v463_v48, 20.0 }
 0x20a   :  { %2077 = vpow2.f32 %v465_v49 }
 0x217   :  { %v2078_v50 = vpop.eup %2077 }
 0x218   :  { %v467_v51 = vadd.f32 1.0, %v2078_v50  ;;  %v470_v52 = vmul.f32 -0.5, %v2078_v50  ;;  %v473_v54 = vand.u32 2147483647, %v2078_v50 }
 0x21a   :  { %2079 = vlog2.f32 %v467_v51  ;;  %v471_v53 = vadd.f32 1.0, %v470_v52  ;;  %vm474_vm13 = vcmp.lt.f32.partialorder %v473_v54, 0.0004427343 }
 0x21c   :  { %v472_v57 = vmul.f32 %v2078_v50, %v471_v53 }
 0x227   :  { %v2080_v55 = vpop.eup %2079 }
 0x228   :  { %v469_v56 = vmul.f32 0.6931472, %v2080_v55 }
 0x22a   :  { %v475_v58 = vsel %vm474_vm13, %v472_v57, %v469_v56 }
 0x22b   :  { %v476_v60 = vsel %vm464_vm14, %v463_v48, %v475_v58 }
 0x22c   :  { %v526_v61 = vrot.slane %v476_v60, 7  ;;  %1883 = vmatmul.mubr.f32.vlgmr.msra.gmra.mxu1 %v476_v60  ;;  %v530_v12 = vrot.slane %v476_v60, 1 }
 0x22d   :  { %1921 = vmatpush3.msra.mxu1 %v524_v59  ;;  %1952 = vmatprep.mubr.msk.f32.mxu1 %vm2124_vm7, %v2123_v21 }
 0x22e   :  { %v528_v63 = vsel %vm87_vm0, 0.0, %v526_v61  ;;  %1922 = vmatprep.subr.mxu1 %v2123_v21  ;;  %v532_v15 = vsel %vm92_vm1, %v530_v12, 0.0 }
 0x22f   :  { %1923 = vmatpush3.msra.mxu1 %v523_v62  ;;  %v529_v1 = vmul.f32 %v528_v63, %v2234_v16  ;;  %v533_v19 = vmul.f32 %v532_v15, %v2236_v17 }
 0x230   :  { %1924 = vmatprep.subr.mxu1 %v2123_v21 }
 0x231   :  { %1925 = vmatpush3.msra.mxu1 %v522_v0  ;;  %1918 = vmatmul.mubr.f32.vlgmr.msra.gmra.mxu0 %v529_v1  ;;  %v765_v1 = vld [vmem:[%s2807_s8] sm:$0x1] }
 0x232   :  { %1926 = vmatprep.subr.mxu1 %v2123_v21  ;;  %1971 = vmatprep.mubr.msk.f32.mxu0 %vm2124_vm7, %v2123_v21 }
 0x233   :  { %1927 = vmatpush3.msra.mxu1 %v521_v2  ;;  %1956 = vmatpush3.msra.mxu0 %v808_v20  ;;  %v800_v20 = vld [vmem:[%s2809_s10 + $0x38] sm:$0xff] }
 0x234   :  { %1928 = vmatprep.subr.mxu1 %v2123_v21  ;;  %1957 = vmatprep.subr.mxu0 %v2123_v21 }
 0x235   :  { %1929 = vmatpush3.msra.mxu1 %v520_v3  ;;  %1958 = vmatpush3.msra.mxu0 %v807_v22 }
 0x236   :  { %1930 = vmatprep.subr.mxu1 %v2123_v21  ;;  %1959 = vmatprep.subr.mxu0 %v2123_v21 }
 0x237   :  { %1931 = vmatpush3.msra.mxu1 %v519_v4  ;;  %1960 = vmatpush3.msra.mxu0 %v806_v24  ;;  %v799_v24 = vld [vmem:[%s2809_s10 + $0x30] sm:$0xff] }
 0x238   :  { %1932 = vmatprep.subr.mxu1 %v2123_v21  ;;  %1961 = vmatprep.subr.mxu0 %v2123_v21 }
 0x239   :  { %1933 = vmatpush3.msra.mxu1 %v518_v5  ;;  %1962 = vmatpush3.msra.mxu0 %v805_v27  ;;  %v1651_v5 = vld [vmem:[%s2808_s9] ss:$0 sm:$0xff]  ;;  %s2125_s9 = smov [#allocation2]  }
 0x23a   :  { %1934 = vmatprep.subr.mxu1 %v2123_v21  ;;  %1963 = vmatprep.subr.mxu0 %v2123_v21  ;;  %s1638_s0 = sshll.u32 %s2125_s9, 4  ;;  %s1639_s0 = int_to_ptr.vmem [resolvable:$true] %s1638_s0 }
 0x23b   :  { %1935 = vmatpush3.msra.mxu1 %v517_v6  ;;  %1964 = vmatpush3.msra.mxu0 %v804_v29  ;;  %v796_v29 = vld [vmem:[%s2809_s10 + $0x18] sm:$0xff]  ;;  %s2099_s19 = scalar_lea.vmem %s1639_s0, 128  ;;  %p2104_p1 = scmp.lt.s32.totalorder %s1639_s0, %s1639_s0 }
 0x23c   :  { %1936 = vmatprep.subr.mxu1 %v2123_v21  ;;  %1965 = vmatprep.subr.mxu0 %v2123_v21  ;;  %p2100_p0 = scmp.ne.s32.totalorder %s1639_s0, %s2099_s19  ;;  %p2105_p2 = scmp.lt.s32.totalorder %s2099_s19, %s2099_s19 }
 0x23d   :  { %1937 = vmatpush3.msra.mxu1 %v516_v7  ;;  %1966 = vmatpush3.msra.mxu0 %v803_v31  ;;  %v795_v31 = vld [vmem:[%s2809_s10 + $0x10] sm:$0xff] }
 0x23e   :  { %1938 = vmatprep.subr.mxu1 %v2123_v21  ;;  %1967 = vmatprep.subr.mxu0 %v2123_v21  ;;  %p2106_p3 = por %p2105_p2, %p2104_p1 }
 0x23f   :  { %1939 = vmatpush3.msra.mxu1 %v515_v8  ;;  %1968 = vmatpush3.msra.mxu0 %v802_v32  ;;  %v794_v32 = vld [vmem:[%s2809_s10 + $0x8] sm:$0xff] }
 0x240   :  { %1940 = vmatprep.subr.mxu1 %v2123_v21  ;;  %1969 = vmatprep.subr.mxu0 %v2123_v21  ;;  %p2107_p4 = pnand %p2106_p3, %p2100_p0 }
 0x241   :  { %1941 = vmatpush3.msra.mxu1 %v514_v9  ;;  %1970 = vmatpush3.msra.mxu0 %v801_v33 }
 0x242   :  { %1942 = vmatprep.subr.mxu1 %v2123_v21  ;;  %1974 = vmatprep.subr.mxu0 %v2123_v21 }
 0x243   :  { %1943 = vmatpush3.msra.mxu1 %v513_v10 }
 0x244   :  { %1944 = vmatprep.subr.mxu1 %v2123_v21 }
 0x245   :  { %1945 = vmatpush3.msra.mxu1 %v512_v11 }
 0x246   :  { %1946 = vmatprep.subr.mxu1 %v2123_v21 }
 0x247   :  { %1947 = vmatpush3.msra.mxu1 %v511_v13 }
 0x248   :  { %1948 = vmatprep.subr.mxu1 %v2123_v21 }
 0x249   :  { %1949 = vmatpush3.msra.mxu1 %v510_v14 }
 0x24a   :  { %1950 = vmatprep.subr.mxu1 %v2123_v21 }
 0x24b   :  { %1951 = vmatpush3.msra.mxu1 %v509_v18 }
 0x24c   :  { %1953 = vmatmul.mubr.f32.vlgmr.msra.gmra.mxu1 %v533_v19  ;;  %1993 = vmatprep.subr.mxu1 %v2123_v21 }
 0x24d   :  { %2009 = vmatprep.mubr.msk.f32.mxu1 %vm2124_vm7, %v2123_v21  ;;  %1994 = vmatpush3.msra.mxu1 %v816_v23 }
 0x24e   :  { %1995 = vmatprep.subr.mxu1 %v2123_v21 }
 0x24f   :  { %1996 = vmatpush3.msra.mxu1 %v815_v25 }
 0x250   :  { %1997 = vmatprep.subr.mxu1 %v2123_v21 }
 0x251   :  { %1998 = vmatpush3.msra.mxu1 %v814_v26  ;;  %v798_v26 = vld [vmem:[%s2809_s10 + $0x28] sm:$0xff] }
 0x252   :  { %1999 = vmatprep.subr.mxu1 %v2123_v21 }
 0x253   :  { %2000 = vmatpush3.msra.mxu1 %v813_v28  ;;  %v797_v28 = vld [vmem:[%s2809_s10 + $0x20] sm:$0xff] }
 0x254   :  { %2001 = vmatprep.subr.mxu1 %v2123_v21 }
 0x255   :  { %2002 = vmatpush3.msra.mxu1 %v812_v30 }
 0x256   :  { %2003 = vmatprep.subr.mxu1 %v2123_v21 }
 0x257   :  { %2004 = vmatpush3.msra.mxu1 %v811_v35 }
 0x258   :  { %2005 = vmatprep.subr.mxu1 %v2123_v21 }
 0x259   :  { %2006 = vmatpush3.msra.mxu1 %v810_v38  ;;  %v1100_v38 = vld [vmem:[%s2812_s13 + $0x30] sm:$0xff] }
 0x25a   :  { %2007 = vmatprep.subr.mxu1 %v2123_v21 }
 0x25b   :  { %2008 = vmatpush3.msra.mxu1 %v809_v40  ;;  %v1099_v40 = vld [vmem:[%s2812_s13 + $0x28] sm:$0xff] }
 0x25c   :  { %2023 = vmatprep.subr.mxu1 %v2123_v21 }
 0x2ec   :  { %v600_v34 = vpop.f32.mrf.mxu1 }
 0x2ee   :  { %v1884_v36 = vpop.f32.mrf.mxu1 }
 0x2ef   :  { %v1101_v36 = vld [vmem:[%s2812_s13 + $0x38] sm:$0xff] }
 0x2f1   :  { %v670_v39 = vpop.f32.mrf.mxu0 }
 0x2f2   :  { %v671_v42 = vadd.f32 %v670_v39, %v600_v34  ;;  %v793_v34 = vld [vmem:[%s2809_s10] sm:$0xff]  ;;  %v1097_v39 = vld [vmem:[%s2812_s13 + $0x18] sm:$0xff] }
 0x2f3   :  { %v1919_v41 = vpop.f32.mrf.mxu0 }
 0x2f4   :  { %v1098_v41 = vld [vmem:[%s2812_s13 + $0x20] sm:$0xff] }
 0x30c   :  { %v740_v43 = vpop.f32.mrf.mxu1 }
 0x30d   :  { %v744_v44 = vadd.f32 %v740_v43, %v671_v42  ;;  %v1096_v42 = vld [vmem:[%s2812_s13 + $0x10] sm:$0xff]  ;;  %v1095_v43 = vld [vmem:[%s2812_s13 + $0x8] sm:$0xff] }
 0x30e   :  { %v1954_v45 = vpop.f32.mrf.mxu1 }
 0x30f   :  { %v745_v46 = vsel %vm126_vm8, %v744_v44, 0.0 }
 0x310   :  { %v746_v47 = vrot.slane %v745_v46, 4 }
 0x312   :  { %v747_v48 = vadd.f32 %v746_v47, %v745_v46 }
 0x314   :  { %v748_v49 = vrot.slane %v747_v48, 2 }
 0x316   :  { %v749_v50 = vadd.f32 %v748_v49, %v747_v48 }
 0x318   :  { %v750_v51 = vrot.slane %v749_v50, 1 }
 0x31a   :  { %v751_v52 = vadd.f32 %v750_v51, %v749_v50 }
 0x31c   :  { %v752_v53 = vmul.f32 0.16666667, %v751_v52 }
 0x31e   :  { %v753_v54 = vsub.f32 %v744_v44, %v752_v53  ;;  %v1094_v44 = vld [vmem:[%s2812_s13] sm:$0xff] }
 0x320   :  { %v754_v55 = vmul.f32 %v753_v54, %v753_v54 }
 0x322   :  { %v755_v56 = vsel %vm126_vm8, %v754_v55, 0.0  ;;  %vm1335_vm8 = vcmask 29696  }
 0x323   :  { %v756_v57 = vrot.slane %v755_v56, 4 }
 0x325   :  { %v757_v58 = vadd.f32 %v756_v57, %v755_v56 }
 0x327   :  { %v758_v59 = vrot.slane %v757_v58, 2 }
 0x329   :  { %v759_v60 = vadd.f32 %v758_v59, %v757_v58 }
 0x32b   :  { %v760_v61 = vrot.slane %v759_v60, 1 }
 0x32d   :  { %v761_v62 = vadd.f32 %v760_v61, %v759_v60 }
 0x32f   :  { %v762_v63 = vmul.f32 0.16666667, %v761_v62 }
 0x331   :  { %v763_v0 = vadd.f32 1e-05, %v762_v63 }
 0x333   :  { %2081 = vrsqrt.f32 %v763_v0 }
 0x340   :  { %v2082_v2 = vpop.eup %2081 }
 0x341   :  { %v766_v3 = vmul.f32 %v2082_v2, %v765_v1 }
 0x343   :  { %v770_v4 = vrot.slane %v766_v3, %v2311_v37 }
 0x345   :  { %v771_v6 = vmul.f32 %v770_v4, %v753_v54 }
 0x347   :  { %v779_v7 = vadd.f32 %v1651_v5, %v771_v6 }
 0x349   :  { %v781_v8 = vmul.f32 1.442695, %v779_v7  ;;  %vm780_vm2 = vcmp.gt.f32.partialorder %v779_v7, 20.0 }
 0x34b   :  { %2083 = vpow2.f32 %v781_v8  ;;  %v1066_v8 = vld [vmem:[%s2810_s11] sm:$0x1] }
 0x358   :  { %v2084_v9 = vpop.eup %2083 }
 0x359   :  { %v783_v10 = vadd.f32 1.0, %v2084_v9  ;;  %v786_v11 = vmul.f32 -0.5, %v2084_v9  ;;  %v789_v13 = vand.u32 2147483647, %v2084_v9 }
 0x35b   :  { %2085 = vlog2.f32 %v783_v10  ;;  %v787_v12 = vadd.f32 1.0, %v786_v11  ;;  %vm790_vm15 = vcmp.lt.f32.partialorder %v789_v13, 0.0004427343 }
 0x35d   :  { %v788_v18 = vmul.f32 %v2084_v9, %v787_v12  ;;  %v1655_v12 = vld [vmem:[%s2811_s12] ss:$0 sm:$0xff] }
 0x368   :  { %v2086_v14 = vpop.eup %2085 }
 0x369   :  { %v785_v15 = vmul.f32 0.6931472, %v2086_v14 }
 0x36b   :  { %v791_v19 = vsel %vm790_vm15, %v788_v18, %v785_v15 }
 0x36c   :  { %v792_v22 = vsel %vm780_vm2, %v779_v7, %v791_v19 }
 0x36d   :  { %v822_v23 = vrot.slane %v792_v22, 1  ;;  %1972 = vmatmul.mubr.msk.f32.vlgmr.msra.gmra.mxu0 %vm208_vm10, %v792_v22  ;;  %v818_v30 = vrot.slane %v792_v22, 7 }
 0x36e   :  { %1975 = vmatpush3.msra.mxu0 %v800_v20  ;;  %1990 = vmatprep.mubr.msk.f32.mxu0 %vm2124_vm7, %v2123_v21 }
 0x36f   :  { %v824_v25 = vsel %vm92_vm1, %v822_v23, 0.0  ;;  %1976 = vmatprep.subr.mxu0 %v2123_v21  ;;  %v820_v33 = vsel %vm87_vm0, 0.0, %v818_v30 }
 0x370   :  { %v825_v27 = vmul.f32 %v824_v25, %v2236_v17  ;;  %1977 = vmatpush3.msra.mxu0 %v799_v24  ;;  %v821_v35 = vmul.f32 %v820_v33, %v2234_v16 }
 0x371   :  { %1978 = vmatprep.subr.mxu0 %v2123_v21 }
 0x372   :  { %1979 = vmatpush3.msra.mxu0 %v798_v26  ;;  %2010 = vmatmul.mubr.msk.f32.vlgmr.msra.gmra.mxu1 %vm208_vm10, %v825_v27 }
 0x373   :  { %1980 = vmatprep.subr.mxu0 %v2123_v21  ;;  %2031 = vmatprep.mubr.msk.f32.mxu1 %vm2124_vm7, %v2123_v21 }
 0x374   :  { %1981 = vmatpush3.msra.mxu0 %v797_v28  ;;  %2024 = vmatpush3.msra.mxu1 %v1097_v39  ;;  %v1105_v28 = vld [vmem:[%s2812_s13 + $0x58] sm:$0xff] }
 0x375   :  { %1982 = vmatprep.subr.mxu0 %v2123_v21  ;;  %2025 = vmatprep.subr.mxu1 %v2123_v21 }
 0x376   :  { %1983 = vmatpush3.msra.mxu0 %v796_v29  ;;  %2026 = vmatpush3.msra.mxu1 %v1096_v42 }
 0x377   :  { %1984 = vmatprep.subr.mxu0 %v2123_v21  ;;  %2027 = vmatprep.subr.mxu1 %v2123_v21 }
 0x378   :  { %1985 = vmatpush3.msra.mxu0 %v795_v31  ;;  %2028 = vmatpush3.msra.mxu1 %v1095_v43 }
 0x379   :  { %1986 = vmatprep.subr.mxu0 %v2123_v21  ;;  %2029 = vmatprep.subr.mxu1 %v2123_v21 }
 0x37a   :  { %1987 = vmatpush3.msra.mxu0 %v794_v32  ;;  %2030 = vmatpush3.msra.mxu1 %v1094_v44  ;;  %v1104_v32 = vld [vmem:[%s2812_s13 + $0x50] sm:$0xff] }
 0x37b   :  { %1988 = vmatprep.subr.mxu0 %v2123_v21  ;;  %2045 = vmatprep.subr.mxu1 %v2123_v21 }
 0x37c   :  { %1989 = vmatpush3.msra.mxu0 %v793_v34  ;;  %v1103_v34 = vld [vmem:[%s2812_s13 + $0x48] sm:$0xff] }
 0x37d   :  { %1991 = vmatmul.mubr.msk.f32.vlgmr.msra.gmra.mxu0 %vm208_vm10, %v821_v35  ;;  %2012 = vmatprep.subr.mxu0 %v2123_v21 }
 0x37e   :  { %2020 = vmatprep.mubr.msk.f32.mxu0 %vm2124_vm7, %v2123_v21  ;;  %2013 = vmatpush3.msra.mxu0 %v1101_v36 }
 0x37f   :  { %2014 = vmatprep.subr.mxu0 %v2123_v21 }
 0x380   :  { %2015 = vmatpush3.msra.mxu0 %v1100_v38  ;;  %v1102_v38 = vld [vmem:[%s2812_s13 + $0x40] sm:$0xff] }
 0x381   :  { %2016 = vmatprep.subr.mxu0 %v2123_v21 }
 0x382   :  { %2017 = vmatpush3.msra.mxu0 %v1099_v40 }
 0x383   :  { %2018 = vmatprep.subr.mxu0 %v2123_v21 }
 0x384   :  { %2019 = vmatpush3.msra.mxu0 %v1098_v41 }
 0x385   :  { %2034 = vmatprep.subr.mxu0 %v2123_v21 }
 0x42d   :  { %v894_v45 = vpop.f32.mrf.mxu0 }
 0x42f   :  { %v1973_v46 = vpop.f32.mrf.mxu0 }
 0x432   :  { %v1040_v47 = vpop.f32.mrf.mxu1 }
 0x434   :  { %v2011_v48 = vpop.f32.mrf.mxu1 }
 0x43d   :  { %v967_v49 = vpop.f32.mrf.mxu0 }
 0x43e   :  { %v968_v50 = vadd.f32 %v967_v49, %v894_v45 }
 0x43f   :  { %v1992_v51 = vpop.f32.mrf.mxu0 }
 0x440   :  { %v1044_v52 = vadd.f32 %v1040_v47, %v968_v50 }
 0x442   :  { %v1046_v53 = vsel %vm1045_vm3, %v1044_v52, 0.0 }
 0x443   :  { %v1047_v54 = vrot.slane %v1046_v53, 4 }
 0x445   :  { %v1048_v55 = vadd.f32 %v1047_v54, %v1046_v53 }
 0x447   :  { %v1049_v56 = vrot.slane %v1048_v55, 2 }
 0x449   :  { %v1050_v57 = vadd.f32 %v1049_v56, %v1048_v55 }
 0x44b   :  { %v1051_v58 = vrot.slane %v1050_v57, 1 }
 0x44d   :  { %v1052_v59 = vadd.f32 %v1051_v58, %v1050_v57 }
 0x44f   :  { %v1053_v60 = vmul.f32 0.16666667, %v1052_v59 }
 0x451   :  { %v1054_v61 = vsub.f32 %v1044_v52, %v1053_v60 }
 0x453   :  { %v1055_v62 = vmul.f32 %v1054_v61, %v1054_v61 }
 0x455   :  { %v1056_v63 = vsel %vm1045_vm3, %v1055_v62, 0.0 }
 0x456   :  { %v1057_v0 = vrot.slane %v1056_v63, 4 }
 0x458   :  { %v1058_v1 = vadd.f32 %v1057_v0, %v1056_v63 }
 0x45a   :  { %v1059_v2 = vrot.slane %v1058_v1, 2 }
 0x45c   :  { %v1060_v3 = vadd.f32 %v1059_v2, %v1058_v1 }
 0x45e   :  { %v1061_v4 = vrot.slane %v1060_v3, 1 }
 0x460   :  { %v1062_v5 = vadd.f32 %v1061_v4, %v1060_v3  ;;  %v1356_v4 = vld [vmem:[%s2813_s14] sm:$0x1] }
 0x462   :  { %v1063_v6 = vmul.f32 0.16666667, %v1062_v5 }
 0x464   :  { %v1064_v7 = vadd.f32 1e-05, %v1063_v6 }
 0x466   :  { %2087 = vrsqrt.f32 %v1064_v7 }
 0x473   :  { %v2088_v9 = vpop.eup %2087 }
 0x474   :  { %v1067_v10 = vmul.f32 %v2088_v9, %v1066_v8  ;;  %v1659_v8 = vld [vmem:[%s2814_s15] ss:$0 sm:$0xff] }
 0x476   :  { %v1071_v11 = vrot.slane %v1067_v10, %v2311_v37 }
 0x478   :  { %v1072_v13 = vmul.f32 %v1071_v11, %v1054_v61 }
 0x47a   :  { %v1080_v14 = vadd.f32 %v1655_v12, %v1072_v13 }
 0x47c   :  { %v1082_v15 = vmul.f32 1.442695, %v1080_v14  ;;  %vm1081_vm6 = vcmp.gt.f32.partialorder %v1080_v14, 20.0 }
 0x47e   :  { %2089 = vpow2.f32 %v1082_v15 }
 0x48b   :  { %v2090_v18 = vpop.eup %2089 }
 0x48c   :  { %v1084_v19 = vadd.f32 1.0, %v2090_v18  ;;  %v1087_v20 = vmul.f32 -0.5, %v2090_v18  ;;  %v1090_v23 = vand.u32 2147483647, %v2090_v18 }
 0x48e   :  { %2091 = vlog2.f32 %v1084_v19  ;;  %v1088_v22 = vadd.f32 1.0, %v1087_v20  ;;  %vm1091_vm4 = vcmp.lt.f32.partialorder %v1090_v23, 0.0004427343 }
 0x490   :  { %v1089_v26 = vmul.f32 %v2090_v18, %v1088_v22 }
 0x49b   :  { %v2092_v24 = vpop.eup %2091 }
 0x49c   :  { %v1086_v25 = vmul.f32 0.6931472, %v2092_v24 }
 0x49e   :  { %v1092_v27 = vsel %vm1091_vm4, %v1089_v26, %v1086_v25 }
 0x49f   :  { %v1093_v29 = vsel %vm1081_vm6, %v1080_v14, %v1092_v27 }
 0x4a0   :  { %v1107_v30 = vrot.slane %v1093_v29, 7  ;;  %v1111_v31 = vrot.slane %v1093_v29, 1  ;;  %2021 = vmatmul.mubr.msk.f32.vlgmr.msra.gmra.mxu0 %vm1115_vm5, %v1093_v29 }
 0x4a1   :  { %2035 = vmatpush3.msra.mxu0 %v1105_v28  ;;  %2042 = vmatprep.mubr.msk.f32.mxu0 %vm2124_vm7, %v2123_v21 }
 0x4a2   :  { %v1109_v33 = vsel %vm87_vm0, 0.0, %v1107_v30  ;;  %2036 = vmatprep.subr.mxu0 %v2123_v21  ;;  %v1113_v36 = vsel %vm92_vm1, %v1111_v31, 0.0  ;;  %vm1396_vm0 = vcmask 1043456  }
 0x4a3   :  { %v1110_v35 = vmul.f32 %v1109_v33, %v2234_v16  ;;  %2037 = vmatpush3.msra.mxu0 %v1104_v32  ;;  %v1114_v39 = vmul.f32 %v1113_v36, %v2236_v17  ;;  %v2771_v16 = vld [vmem:[%s2815_s16] sm:$0xff]  ;;  %v1385_v17 = vld [vmem:[%s2815_s16 + $0x8] sm:$0xf] }
 0x4a4   :  { %2038 = vmatprep.subr.mxu0 %v2123_v21  ;;  %v1391_v40 = vrot.slane %v2771_v16, 4 }
 0x4a5   :  { %2039 = vmatpush3.msra.mxu0 %v1103_v34  ;;  %2032 = vmatmul.mubr.msk.f32.vlgmr.msra.gmra.mxu1 %vm1115_vm5, %v1110_v35  ;;  %v1666_v35 = vld [vmem:[%s2816_s17] ss:$0 sm:$0xff] }
 0x4a6   :  { %2040 = vmatprep.subr.mxu0 %v2123_v21  ;;  %2047 = vmatprep.mubr.msk.f32.mxu1 %vm2124_vm7, %v2123_v21 }
 0x4a7   :  { %2041 = vmatpush3.msra.mxu0 %v1102_v38  ;;  %2046 = vmatpush3.msk.msra.mxu1 %vm1396_vm0, %v1391_v40 }
 0x4a8   :  { %2043 = vmatmul.mubr.msk.f32.vlgmr.msra.gmra.mxu0 %vm1115_vm5, %v1114_v39  ;;  %2055 = vmatprep.subr.mxu0 %v2123_v21 }
 0x4a9   :  { %2057 = vmatprep.mubr.msk.f32.mxu0 %vm2124_vm7, %v2123_v21  ;;  %2056 = vmatpush3.msk.msra.mxu0 %vm1396_vm0, %v1385_v17 }
 0x4aa   :  { %2050 = vmatprep.subr.mxu1 %v2123_v21 }
 0x560   :  { %v1184_v41 = vpop.f32.mrf.mxu0 }
 0x562   :  { %v2022_v42 = vpop.f32.mrf.mxu0 }
 0x565   :  { %v1257_v43 = vpop.f32.mrf.mxu1 }
 0x566   :  { %v1258_v44 = vadd.f32 %v1257_v43, %v1184_v41 }
 0x567   :  { %v2033_v45 = vpop.f32.mrf.mxu1 }
 0x568   :  { %v1330_v46 = vpop.f32.mrf.mxu0 }
 0x569   :  { %v1334_v47 = vadd.f32 %v1330_v46, %v1258_v44 }
 0x56a   :  { %v2044_v48 = vpop.f32.mrf.mxu0 }
 0x56b   :  { %v1336_v49 = vsel %vm1335_vm8, %v1334_v47, 0.0 }
 0x56c   :  { %v1337_v50 = vrot.slane %v1336_v49, 4 }
 0x56e   :  { %v1338_v51 = vadd.f32 %v1337_v50, %v1336_v49 }
 0x570   :  { %v1339_v52 = vrot.slane %v1338_v51, 2 }
 0x572   :  { %v1340_v53 = vadd.f32 %v1339_v52, %v1338_v51 }
 0x574   :  { %v1341_v54 = vrot.slane %v1340_v53, 1 }
 0x576   :  { %v1342_v55 = vadd.f32 %v1341_v54, %v1340_v53 }
 0x578   :  { %v1343_v56 = vmul.f32 0.16666667, %v1342_v55 }
 0x57a   :  { %v1344_v57 = vsub.f32 %v1334_v47, %v1343_v56 }
 0x57c   :  { %v1345_v58 = vmul.f32 %v1344_v57, %v1344_v57 }
 0x57e   :  { %v1346_v59 = vsel %vm1335_vm8, %v1345_v58, 0.0 }
 0x57f   :  { %v1347_v60 = vrot.slane %v1346_v59, 4 }
 0x581   :  { %v1348_v61 = vadd.f32 %v1347_v60, %v1346_v59 }
 0x583   :  { %v1349_v62 = vrot.slane %v1348_v61, 2 }
 0x585   :  { %v1350_v63 = vadd.f32 %v1349_v62, %v1348_v61 }
 0x587   :  { %v1351_v0 = vrot.slane %v1350_v63, 1 }
 0x589   :  { %v1352_v1 = vadd.f32 %v1351_v0, %v1350_v63 }
 0x58b   :  { %v1353_v2 = vmul.f32 0.16666667, %v1352_v1 }
 0x58d   :  { %v1354_v3 = vadd.f32 1e-05, %v1353_v2 }
 0x58f   :  { %2093 = vrsqrt.f32 %v1354_v3 }
 0x59c   :  { %v2094_v5 = vpop.eup %2093 }
 0x59d   :  { %v1357_v6 = vmul.f32 %v2094_v5, %v1356_v4 }
 0x59f   :  { %v1361_v7 = vrot.slane %v1357_v6, %v2311_v37 }
 0x5a1   :  { %v1362_v9 = vmul.f32 %v1361_v7, %v1344_v57 }
 0x5a3   :  { %v1370_v10 = vadd.f32 %v1659_v8, %v1362_v9 }
 0x5a5   :  { %v1372_v11 = vmul.f32 1.442695, %v1370_v10  ;;  %vm1371_vm10 = vcmp.gt.f32.partialorder %v1370_v10, 20.0 }
 0x5a7   :  { %2095 = vpow2.f32 %v1372_v11 }
 0x5b4   :  { %v2096_v12 = vpop.eup %2095 }
 0x5b5   :  { %v1374_v13 = vadd.f32 1.0, %v2096_v12  ;;  %v1377_v14 = vmul.f32 -0.5, %v2096_v12  ;;  %v1380_v18 = vand.u32 2147483647, %v2096_v12 }
 0x5b7   :  { %2097 = vlog2.f32 %v1374_v13  ;;  %v1378_v15 = vadd.f32 1.0, %v1377_v14  ;;  %vm1381_vm9 = vcmp.lt.f32.partialorder %v1380_v18, 0.0004427343 }
 0x5b9   :  { %v1379_v22 = vmul.f32 %v2096_v12, %v1378_v15 }
 0x5c4   :  { %v2098_v19 = vpop.eup %2097 }
 0x5c5   :  { %v1376_v20 = vmul.f32 0.6931472, %v2098_v19 }
 0x5c7   :  { %v1382_v37 = vsel %vm1381_vm9, %v1379_v22, %v1376_v20 }
 0x5c8   :  { %v1383_v23 = vsel %vm1371_vm10, %v1370_v10, %v1382_v37 }
 0x5c9   :  { %v1387_v24 = vrot.slane %v1383_v23, 1  ;;  %v1543_v25 = vrot.slane %v1383_v23, 2 }
 0x5cb   :  { %v1389_v26 = vsel %vm92_vm1, %v1387_v24, 0.0  ;;  %v1545_v27 = vsel %vm1396_vm0, %v1543_v25, 0.0 }
 0x5cc   :  { %2048 = vmatmul.mubr.msk.f32.vlgmr.msra.gmra.mxu1 %vm1392_vm11, %v1389_v26  ;;  %2058 = vmatmul.mubr.msk.f32.vlgmr.msra.gmra.mxu0 %vm1392_vm11, %v1545_v27 }
 0x5cd   :  { %2051 = vmatpush3.msk.msra.mxu1 %vm1396_vm0, %v2771_v16  ;;  %2052 = vmatprep.mubr.msk.f32.mxu1 %vm2124_vm7, %v2123_v21 }
 0x5d0   :  { %2053 = vmatmul.mubr.msk.f32.vlgmr.msra.gmra.mxu1 %vm1392_vm11, %v1383_v23 }
 0x68c   :  { %v1465_v28 = vpop.f32.mrf.mxu1  ;;  %v1618_v29 = vpop.f32.mrf.mxu0 }
 0x68e   :  { %v2049_v30 = vpop.f32.mrf.mxu1  ;;  %v2059_v31 = vpop.f32.mrf.mxu0 }
 0x690   :  { %v1539_v32 = vpop.f32.mrf.mxu1 }
 0x691   :  { %v1540_v33 = vadd.f32 %v1539_v32, %v1465_v28 }
 0x692   :  { %v2054_v34 = vpop.f32.mrf.mxu1 }
 0x693   :  { %v1622_v36 = vadd.f32 %v1618_v29, %v1540_v33 }
 0x695   :  { %v1630_v38 = vadd.f32 %v1666_v35, %v1622_v36 }
 0x697   :  { %1631 = vst [vmem:[#allocation2] sm:$0x3f] %v1630_v38 }
 0x698   :  { %2110 = shalt.err (!%p2107_p4)
}
 0x699   :  { %1641 = dma.vmem_to_hbm [thread:$0]  %s1639_s0, 128, %s2817_s18, [#allocation3]  }
 0x69a   :  { %2119 = dma.done.wait [#allocation3], 128  }
 0x69b   :  { %2120 = vsyncadd [#allocation3], 4294967168 }
 0x69c   :  { %1645 = vsyncpa [#allocation3], 1 }

</bundles_post_ra>
